<compile_context>
chip_gen: v6e
topology: v6e:2x2x1
jax: 0.10.0
libtpu: 0.0.40
codegen_flags: <defaults>
</compile_context>

<pallas_src>
import functools

import jax
import jax.numpy as jnp
from jax import lax
from jax.experimental import pallas as pl
from jax.experimental.pallas import tpu as pltpu

HIDDEN = 32
EPS = 1e-5                        # PyTorch BatchNorm2d default eps
VMEM_LIMIT = 32 * 1024 * 1024     # explicit scoped-VMEM budget (safe on v5e/v6e/v7x)


# ----------------------------------------------------------------------------
# Kernel A: Conv3x3(pad=1) + MaxPool2x2 + bias + ReLU + full BatchNorm2d,
#           one im2col matmul, one grid step (exact batch statistics).
# ----------------------------------------------------------------------------
def _block1_kernel(p_ref, w_ref, b_ref, g_ref, beta_ref, o_ref, *, inv_n):
    c = o_ref.shape[1]
    # (N1, 16*Cin) @ (16*Cin, 4*Cout) on the MXU, f32 accumulation.
    y = jnp.dot(p_ref[...], w_ref[...], preferred_element_type=jnp.float32)
    # MaxPool over the 4 pooling branches packed along the lane axis.
    m = jnp.maximum(jnp.maximum(y[:, 0:c], y[:, c:2 * c]),
                    jnp.maximum(y[:, 2 * c:3 * c], y[:, 3 * c:4 * c]))
    # Conv bias hoisted after the max (per-channel shift commutes with max).
    act = jnp.maximum(m + b_ref[...], 0.0)
    # Train-mode BatchNorm: biased batch stats over all (B, H/2, W/2) rows.
    mean = jnp.sum(act, axis=0, keepdims=True) * inv_n
    var = jnp.maximum(jnp.sum(act * act, axis=0, keepdims=True) * inv_n
                      - mean * mean, 0.0)
    scale = g_ref[...] * lax.rsqrt(var + EPS)
    o_ref[...] = ((act - mean) * scale + beta_ref[...]).astype(o_ref.dtype)


def block1_pallas(p1, pw1, b1, g1, beta1):
    n1, k1 = p1.shape
    c1 = pw1.shape[1] // 4
    return pl.pallas_call(
        functools.partial(_block1_kernel, inv_n=1.0 / n1),
        out_shape=jax.ShapeDtypeStruct((n1, c1), jnp.bfloat16),
        grid=(1,),
        in_specs=[pl.BlockSpec((n1, k1), lambda i: (0, 0)),
                  pl.BlockSpec((k1, 4 * c1), lambda i: (0, 0)),
                  pl.BlockSpec((1, c1), lambda i: (0, 0)),
                  pl.BlockSpec((1, c1), lambda i: (0, 0)),
                  pl.BlockSpec((1, c1), lambda i: (0, 0))],
        out_specs=pl.BlockSpec((n1, c1), lambda i: (0, 0)),
        compiler_params=pltpu.CompilerParams(
            dimension_semantics=("arbitrary",), vmem_limit_bytes=VMEM_LIMIT),
    )(p1, pw1, b1, g1, beta1)


# ----------------------------------------------------------------------------
# Kernel B: Conv3x3 + MaxPool2x2 + bias + ReLU + BatchNorm2d(32) + cnn_tail
#           Linear + vector Linear+ReLU + concat (slice stores) — fully fused.
#           Block-2 activation rows arrive (spatial, batch)-ordered so the
#           tail contraction only needs contiguous static row slices.
# ----------------------------------------------------------------------------
def _block2_heads_kernel(p_ref, w_ref, b_ref, g_ref, beta_ref,
                         vec_ref, wv_ref, bv_ref, wt_ref, bt_ref, o_ref,
                         *, inv_n, batch, s2, hidden):
    c = g_ref.shape[1]
    # conv2 + maxpool + bias + relu (one lane-dense matmul, K=256, N=128).
    y = jnp.dot(p_ref[...], w_ref[...], preferred_element_type=jnp.float32)
    m = jnp.maximum(jnp.maximum(y[:, 0:c], y[:, c:2 * c]),
                    jnp.maximum(y[:, 2 * c:3 * c], y[:, 3 * c:4 * c]))
    act = jnp.maximum(m + b_ref[...], 0.0)
    # Train-mode BatchNorm2d(32): stats over all (B, H/4, W/4) rows.
    mean = jnp.sum(act, axis=0, keepdims=True) * inv_n
    var = jnp.maximum(jnp.sum(act * act, axis=0, keepdims=True) * inv_n
                      - mean * mean, 0.0)
    scale = g_ref[...] * lax.rsqrt(var + EPS)
    z = ((act - mean) * scale + beta_ref[...]).astype(jnp.bfloat16)  # (S2*B, 32)

    # Vector branch Linear + ReLU -> left half of the output (slice store).
    v = jnp.dot(vec_ref[...].astype(jnp.bfloat16), wv_ref[...],
                preferred_element_type=jnp.float32) + bv_ref[...]
    o_ref[:, 0:hidden] = jnp.maximum(v, 0.0).astype(o_ref.dtype)

    # cnn_tail Linear: contract (spatial, channel).  Rows of z are ordered
    # (spatial s, batch b), so rows for a fixed s are a contiguous 2-row slice.
    t = jnp.zeros((batch, hidden), jnp.float32)
    for s in range(s2):                       # static unroll (S2 = 16 here)
        t = t + jnp.dot(z[s * batch:(s + 1) * batch, :], wt_ref[s],
                        preferred_element_type=jnp.float32)
    o_ref[:, hidden:2 * hidden] = (t + bt_ref[...]).astype(o_ref.dtype)


def block2_heads_pallas(p2, pw2, b2, g2, beta2, vec, wv, bv, wt3, bt,
                        *, batch, hidden):
    n2, k2 = p2.shape
    c2 = g2.shape[1]
    s2 = n2 // batch
    d = vec.shape[1]
    kern = functools.partial(_block2_heads_kernel, inv_n=1.0 / n2,
                             batch=batch, s2=s2, hidden=hidden)
    return pl.pallas_call(
        kern,
        out_shape=jax.ShapeDtypeStruct((batch, 2 * hidden), jnp.float32),
        grid=(1,),
        in_specs=[pl.BlockSpec((n2, k2), lambda i: (0, 0)),
                  pl.BlockSpec((k2, 4 * c2), lambda i: (0, 0)),
                  pl.BlockSpec((1, c2), lambda i: (0, 0)),
                  pl.BlockSpec((1, c2), lambda i: (0, 0)),
                  pl.BlockSpec((1, c2), lambda i: (0, 0)),
                  pl.BlockSpec((batch, d), lambda i: (0, 0)),
                  pl.BlockSpec((d, hidden), lambda i: (0, 0)),
                  pl.BlockSpec((1, hidden), lambda i: (0, 0)),
                  pl.BlockSpec((s2, c2, hidden), lambda i: (0, 0, 0)),
                  pl.BlockSpec((1, hidden), lambda i: (0, 0))],
        out_specs=pl.BlockSpec((batch, 2 * hidden), lambda i: (0, 0)),
        compiler_params=pltpu.CompilerParams(
            dimension_semantics=("arbitrary",), vmem_limit_bytes=VMEM_LIMIT),
    )(p2, pw2, b2, g2, beta2, vec, wv, bv, wt3, bt)


# ----------------------------------------------------------------------------
# Wrapper glue (plain JAX, bf16 end-to-end): im2col patches + layout plumbing.
# ----------------------------------------------------------------------------
def _im2col_pool_patches(x_nhwc, *, spatial_major):
    """(B,H,W,C) -> (B*(H//2)*(W//2), 16*C): for every pooled output pixel the
    4x4 zero-padded-input patch covering its four 3x3 conv receptive fields.
    Column index = (r*4 + s)*C + c.  Row order is (b, i, j) by default, or
    (i, j, b) when spatial_major=True (used for block 2 so the tail matmul in
    the fused heads kernel only needs contiguous static row slices)."""
    b, h, w, c = x_nhwc.shape
    ho, wo = h // 2, w // 2
    xp = jnp.pad(x_nhwc, ((0, 0), (1, 1), (1, 1), (0, 0)))
    taps = []
    for r in range(4):
        for s in range(4):
            taps.append(lax.slice(xp, (0, r, s, 0),
                                  (b, r + 2 * ho - 1, s + 2 * wo - 1, c),
                                  (1, 2, 2, 1)))
    patches = jnp.stack(taps, axis=3)                  # (B, Ho, Wo, 16, C)
    if spatial_major:
        patches = jnp.transpose(patches, (1, 2, 0, 3, 4))  # (Ho, Wo, B, 16, C)
    return patches.reshape(b * ho * wo, 16 * c)


def backbones_forward(params, vec_state, img_state_nchw):
    """Forward pass of `Backbones` for state_space = [vector(D,), image(H,H)]."""
    b = vec_state.shape[0]
    hidden = params["mlp_b"].shape[1]

    # ---- image branch ------------------------------------------------------
    x = jnp.transpose(img_state_nchw, (0, 2, 3, 1)).astype(jnp.bfloat16)  # NHWC bf16
    _, h, w, _ = x.shape

    # Block 1 (fully fused incl. BatchNorm2d(16)) -> y1 in bf16.
    p1 = _im2col_pool_patches(x, spatial_major=False)          # (B*H/2*W/2, 48)
    y1 = block1_pallas(p1, params["conv1_pw"], params["conv1_b"],
                       params["bn1_g"], params["bn1_b"])       # (N1, 16) bf16
    y1 = y1.reshape(b, h // 2, w // 2, 16)

    # Block 2 patches, (spatial, batch)-ordered rows, bf16.
    p2 = _im2col_pool_patches(y1, spatial_major=True)          # (B*H/4*W/4, 256)

    # Block 2 + BatchNorm2d(32) + cnn_tail + vector Linear+ReLU + concat.
    return block2_heads_pallas(
        p2, params["conv2_pw"], params["conv2_b"],
        params["bn2_g"], params["bn2_b"],
        vec_state, params["mlp_w"], params["mlp_b"],
        params["tail_w3"], params["tail_b"], batch=b, hidden=hidden)


# ----------------------------------------------------------------------------
# Parameter init + one-time weight packing (packed weights stored in bf16).
# ----------------------------------------------------------------------------
def _pack_conv_pool_weight(w):
    """(3,3,Cin,Cout) conv weight -> (16*Cin, 4*Cout) packed matrix.

    Row (r*4+s)*Cin + c is patch tap (r,s), channel c.  Column blk*Cout + co is
    pooling branch blk = p*2+q.  Entry = w[r-p, s-q, c, co] when 0<=r-p<3 and
    0<=s-q<3, else 0, so one matmul yields all 4 pooling candidates per pixel.
    """
    kh, kw, cin, cout = w.shape
    pw = jnp.zeros((16 * cin, 4 * cout), jnp.float32)
    for p in range(2):
        for q in range(2):
            blk = p * 2 + q
            for a in range(kh):
                for bb in range(kw):
                    r, s = p + a, q + bb
                    row0 = (r * 4 + s) * cin
                    pw = pw.at[row0:row0 + cin,
                               blk * cout:(blk + 1) * cout].set(w[a, bb])
    return pw


def init_params(key, vec_dim, img_hw, hidden):
    c_half, c_out = 16, 32                       # output_channel/2, output_channel
    s2 = (img_hw // 4) * (img_hw // 4)
    after_conv = c_out * s2                      # after_conv_size
    ks = jax.random.split(key, 8)

    def nrm(k, shape):
        return 0.1 * jax.random.normal(k, shape, jnp.float32)

    conv1_w = nrm(ks[2], (3, 3, 3, c_half))      # (kh, kw, Cin, Cout)
    conv2_w = nrm(ks[4], (3, 3, c_half, c_out))

    # cnn_tail weight generated in PyTorch NCHW-flatten row order, permuted once
    # to the NHWC order the Pallas pipeline produces, then reshaped to
    # (spatial, channel, hidden) so the fused heads kernel can index it per
    # spatial position with no runtime transpose / flatten.
    tail_w_nchw = nrm(ks[6], (after_conv, hidden))
    perm = (jnp.arange(c_out)[None, :] * s2 + jnp.arange(s2)[:, None]).reshape(-1)
    tail_w3 = tail_w_nchw[perm].reshape(s2, c_out, hidden)

    return dict(
        mlp_w=nrm(ks[0], (vec_dim, hidden)).astype(jnp.bfloat16),
        mlp_b=nrm(ks[1], (1, hidden)),
        conv1_pw=_pack_conv_pool_weight(conv1_w).astype(jnp.bfloat16),  # (48, 64)
        conv1_b=nrm(ks[3], (1, c_half)),
        bn1_g=jnp.ones((1, c_half), jnp.float32),
        bn1_b=jnp.zeros((1, c_half), jnp.float32),
        conv2_pw=_pack_conv_pool_weight(conv2_w).astype(jnp.bfloat16),  # (256, 128)
        conv2_b=nrm(ks[5], (1, c_out)),
        bn2_g=jnp.ones((1, c_out), jnp.float32),
        bn2_b=jnp.zeros((1, c_out), jnp.float32),
        tail_w3=tail_w3.astype(jnp.bfloat16),                           # (S2, 32, h)
        tail_b=nrm(ks[7], (1, hidden)),
    )


if __name__ == "__main__":
    key = jax.random.PRNGKey(0)
    k_vec, k_img, k_par = jax.random.split(key, 3)

    B, VEC_DIM, IMG_HW = 2, 8, 16
    vec_state = jax.random.normal(k_vec, (B, VEC_DIM), jnp.float32)
    img_state = jax.random.normal(k_img, (B, 3, IMG_HW, IMG_HW), jnp.float32)  # NCHW

    params = init_params(k_par, VEC_DIM, IMG_HW, HIDDEN)

    out = jax.jit(backbones_forward)(params, vec_state, img_state)
    out = jax.block_until_ready(out)

    assert out.shape == (B, 2 * HIDDEN), out.shape
    assert bool(jnp.all(jnp.isfinite(out)))
    print("KERNEL_OK")
</pallas_src>

<mosaic_0001>
module attributes {stable_mosaic.version = 11 : i64} {
  func.func @_block1_kernel(%arg0: i32, %arg1: memref<128x48xbf16, #tpu.memory_space<vmem>>, %arg2: memref<48x64xbf16, #tpu.memory_space<vmem>>, %arg3: memref<1x16xf32, #tpu.memory_space<vmem>>, %arg4: memref<1x16xf32, #tpu.memory_space<vmem>>, %arg5: memref<1x16xf32, #tpu.memory_space<vmem>>, %arg6: memref<128x16xbf16, #tpu.memory_space<vmem>>) attributes {dimension_semantics = [#tpu.dimension_semantics<arbitrary>], iteration_bounds = array<i64: 1>, scalar_prefetch = 0 : i64, scratch_operands = 0 : i64, tpu.core_type = #tpu.core_type<tc>, window_params = [{pipeline_mode = #tpu.pipeline_mode<synchronous>, transform_indices = @transform_0, window_bounds = array<i64: 128, 48>}, {pipeline_mode = #tpu.pipeline_mode<synchronous>, transform_indices = @transform_1, window_bounds = array<i64: 48, 64>}, {pipeline_mode = #tpu.pipeline_mode<synchronous>, transform_indices = @transform_2, window_bounds = array<i64: 1, 16>}, {pipeline_mode = #tpu.pipeline_mode<synchronous>, transform_indices = @transform_3, window_bounds = array<i64: 1, 16>}, {pipeline_mode = #tpu.pipeline_mode<synchronous>, transform_indices = @transform_4, window_bounds = array<i64: 1, 16>}, {pipeline_mode = #tpu.pipeline_mode<synchronous>, transform_indices = @transform_5, window_bounds = array<i64: 128, 16>}]} {
    %c0 = arith.constant 0 : index
    %c0_0 = arith.constant 0 : index
    %0 = vector.load %arg1[%c0, %c0_0] : memref<128x48xbf16, #tpu.memory_space<vmem>>, vector<128x48xbf16>
    %c0_1 = arith.constant 0 : index
    %c0_2 = arith.constant 0 : index
    %1 = vector.load %arg2[%c0_1, %c0_2] : memref<48x64xbf16, #tpu.memory_space<vmem>>, vector<48x64xbf16>
    %cst = arith.constant dense<0.000000e+00> : vector<128x64xf32>
    %2 = tpu.matmul %0, %1, %cst {dimension_numbers = #tpu.dot_dimension_numbers<[1], [0], [0], [1], [0, 0, 1, 1], [], []>} : vector<128x48xbf16>, vector<48x64xbf16>, vector<128x64xf32> -> vector<128x64xf32>
    %3 = vector.extract_strided_slice %2 {offsets = [0, 0], sizes = [128, 16], strides = [1, 1]} : vector<128x64xf32> to vector<128x16xf32>
    %4 = vector.extract_strided_slice %2 {offsets = [0, 16], sizes = [128, 16], strides = [1, 1]} : vector<128x64xf32> to vector<128x16xf32>
    %5 = arith.maximumf %3, %4 : vector<128x16xf32>
    %6 = vector.extract_strided_slice %2 {offsets = [0, 32], sizes = [128, 16], strides = [1, 1]} : vector<128x64xf32> to vector<128x16xf32>
    %7 = vector.extract_strided_slice %2 {offsets = [0, 48], sizes = [128, 16], strides = [1, 1]} : vector<128x64xf32> to vector<128x16xf32>
    %8 = arith.maximumf %6, %7 : vector<128x16xf32>
    %9 = arith.maximumf %5, %8 : vector<128x16xf32>
    %c0_3 = arith.constant 0 : index
    %c0_4 = arith.constant 0 : index
    %10 = vector.load %arg3[%c0_3, %c0_4] : memref<1x16xf32, #tpu.memory_space<vmem>>, vector<1x16xf32>
    %11 = vector.broadcast %10 : vector<1x16xf32> to vector<128x16xf32>
    %12 = arith.addf %9, %11 : vector<128x16xf32>
    %cst_5 = arith.constant 0.000000e+00 : f32
    %13 = vector.broadcast %cst_5 : f32 to vector<128x16xf32>
    %14 = arith.maximumf %12, %13 : vector<128x16xf32>
    %cst_6 = arith.constant dense<0.000000e+00> : vector<16xf32>
    %15 = vector.multi_reduction <add>, %14, %cst_6 [0] : vector<128x16xf32> to vector<16xf32>
    %16 = vector.shape_cast %15 : vector<16xf32> to vector<1x16xf32>
    %cst_7 = arith.constant 7.812500e-03 : f32
    %17 = vector.broadcast %cst_7 : f32 to vector<1x16xf32>
    %18 = arith.mulf %16, %17 : vector<1x16xf32>
    %19 = arith.mulf %14, %14 : vector<128x16xf32>
    %cst_8 = arith.constant dense<0.000000e+00> : vector<16xf32>
    %20 = vector.multi_reduction <add>, %19, %cst_8 [0] : vector<128x16xf32> to vector<16xf32>
    %21 = vector.shape_cast %20 : vector<16xf32> to vector<1x16xf32>
    %cst_9 = arith.constant 7.812500e-03 : f32
    %22 = vector.broadcast %cst_9 : f32 to vector<1x16xf32>
    %23 = arith.mulf %21, %22 : vector<1x16xf32>
    %24 = arith.mulf %18, %18 : vector<1x16xf32>
    %25 = arith.subf %23, %24 : vector<1x16xf32>
    %cst_10 = arith.constant 0.000000e+00 : f32
    %26 = vector.broadcast %cst_10 : f32 to vector<1x16xf32>
    %27 = arith.maximumf %25, %26 : vector<1x16xf32>
    %c0_11 = arith.constant 0 : index
    %c0_12 = arith.constant 0 : index
    %28 = vector.load %arg4[%c0_11, %c0_12] : memref<1x16xf32, #tpu.memory_space<vmem>>, vector<1x16xf32>
    %cst_13 = arith.constant 9.99999974E-6 : f32
    %29 = vector.broadcast %cst_13 : f32 to vector<1x16xf32>
    %30 = arith.addf %27, %29 : vector<1x16xf32>
    %31 = math.rsqrt %30 : vector<1x16xf32>
    %32 = arith.mulf %28, %31 : vector<1x16xf32>
    %33 = vector.broadcast %18 : vector<1x16xf32> to vector<128x16xf32>
    %34 = arith.subf %14, %33 : vector<128x16xf32>
    %35 = vector.broadcast %32 : vector<1x16xf32> to vector<128x16xf32>
    %36 = arith.mulf %34, %35 : vector<128x16xf32>
    %c0_14 = arith.constant 0 : index
    %c0_15 = arith.constant 0 : index
    %37 = vector.load %arg5[%c0_14, %c0_15] : memref<1x16xf32, #tpu.memory_space<vmem>>, vector<1x16xf32>
    %38 = vector.broadcast %37 : vector<1x16xf32> to vector<128x16xf32>
    %39 = arith.addf %36, %38 : vector<128x16xf32>
    %40 = arith.truncf %39 : vector<128x16xf32> to vector<128x16xbf16>
    %c0_16 = arith.constant 0 : index
    %c0_17 = arith.constant 0 : index
    %41 = vector.load %arg6[%c0_16, %c0_17] : memref<128x16xbf16, #tpu.memory_space<vmem>>, vector<128x16xbf16>
    tpu.vector_store %arg6[%c0_16, %c0_17], %40 {strides = array<i32>} : memref<128x16xbf16, #tpu.memory_space<vmem>>, vector<128x16xbf16>,
    return
  }
  func.func @transform_0(%arg0: i32) -> (i32, i32) {
    %c0_i32 = arith.constant 0 : i32
    %c0_i32_0 = arith.constant 0 : i32
    %c0_i32_1 = arith.constant 0 : i32
    return %c0_i32, %c0_i32_0 : i32, i32
  }
  func.func @transform_1(%arg0: i32) -> (i32, i32) {
    %c0_i32 = arith.constant 0 : i32
    %c0_i32_0 = arith.constant 0 : i32
    %c0_i32_1 = arith.constant 0 : i32
    return %c0_i32, %c0_i32_0 : i32, i32
  }
  func.func @transform_2(%arg0: i32) -> (i32, i32) {
    %c0_i32 = arith.constant 0 : i32
    %c0_i32_0 = arith.constant 0 : i32
    %c0_i32_1 = arith.constant 0 : i32
    return %c0_i32, %c0_i32_0 : i32, i32
  }
  func.func @transform_3(%arg0: i32) -> (i32, i32) {
    %c0_i32 = arith.constant 0 : i32
    %c0_i32_0 = arith.constant 0 : i32
    %c0_i32_1 = arith.constant 0 : i32
    return %c0_i32, %c0_i32_0 : i32, i32
  }
  func.func @transform_4(%arg0: i32) -> (i32, i32) {
    %c0_i32 = arith.constant 0 : i32
    %c0_i32_0 = arith.constant 0 : i32
    %c0_i32_1 = arith.constant 0 : i32
    return %c0_i32, %c0_i32_0 : i32, i32
  }
  func.func @transform_5(%arg0: i32) -> (i32, i32) {
    %c0_i32 = arith.constant 0 : i32
    %c0_i32_0 = arith.constant 0 : i32
    %c0_i32_1 = arith.constant 0 : i32
    return %c0_i32, %c0_i32_0 : i32, i32
  }
}

module attributes {stable_mosaic.version = 11 : i64} {
  func.func @_block2_heads_kernel(%arg0: i32, %arg1: memref<32x256xbf16, #tpu.memory_space<vmem>>, %arg2: memref<256x128xbf16, #tpu.memory_space<vmem>>, %arg3: memref<1x32xf32, #tpu.memory_space<vmem>>, %arg4: memref<1x32xf32, #tpu.memory_space<vmem>>, %arg5: memref<1x32xf32, #tpu.memory_space<vmem>>, %arg6: memref<2x8xf32, #tpu.memory_space<vmem>>, %arg7: memref<8x32xbf16, #tpu.memory_space<vmem>>, %arg8: memref<1x32xf32, #tpu.memory_space<vmem>>, %arg9: memref<16x32x32xbf16, #tpu.memory_space<vmem>>, %arg10: memref<1x32xf32, #tpu.memory_space<vmem>>, %arg11: memref<2x64xf32, #tpu.memory_space<vmem>>) attributes {dimension_semantics = [#tpu.dimension_semantics<arbitrary>], iteration_bounds = array<i64: 1>, scalar_prefetch = 0 : i64, scratch_operands = 0 : i64, tpu.core_type = #tpu.core_type<tc>, window_params = [{pipeline_mode = #tpu.pipeline_mode<synchronous>, transform_indices = @transform_0, window_bounds = array<i64: 32, 256>}, {pipeline_mode = #tpu.pipeline_mode<synchronous>, transform_indices = @transform_1, window_bounds = array<i64: 256, 128>}, {pipeline_mode = #tpu.pipeline_mode<synchronous>, transform_indices = @transform_2, window_bounds = array<i64: 1, 32>}, {pipeline_mode = #tpu.pipeline_mode<synchronous>, transform_indices = @transform_3, window_bounds = array<i64: 1, 32>}, {pipeline_mode = #tpu.pipeline_mode<synchronous>, transform_indices = @transform_4, window_bounds = array<i64: 1, 32>}, {pipeline_mode = #tpu.pipeline_mode<synchronous>, transform_indices = @transform_5, window_bounds = array<i64: 2, 8>}, {pipeline_mode = #tpu.pipeline_mode<synchronous>, transform_indices = @transform_6, window_bounds = array<i64: 8, 32>}, {pipeline_mode = #tpu.pipeline_mode<synchronous>, transform_indices = @transform_7, window_bounds = array<i64: 1, 32>}, {pipeline_mode = #tpu.pipeline_mode<synchronous>, transform_indices = @transform_8, window_bounds = array<i64: 16, 32, 32>}, {pipeline_mode = #tpu.pipeline_mode<synchronous>, transform_indices = @transform_9, window_bounds = array<i64: 1, 32>}, {pipeline_mode = #tpu.pipeline_mode<synchronous>, transform_indices = @transform_10, window_bounds = array<i64: 2, 64>}]} {
    %c0 = arith.constant 0 : index
    %c0_0 = arith.constant 0 : index
    %0 = vector.load %arg1[%c0, %c0_0] : memref<32x256xbf16, #tpu.memory_space<vmem>>, vector<32x256xbf16>
    %c0_1 = arith.constant 0 : index
    %c0_2 = arith.constant 0 : index
    %1 = vector.load %arg2[%c0_1, %c0_2] : memref<256x128xbf16, #tpu.memory_space<vmem>>, vector<256x128xbf16>
    %cst = arith.constant dense<0.000000e+00> : vector<32x128xf32>
    %2 = tpu.matmul %0, %1, %cst {dimension_numbers = #tpu.dot_dimension_numbers<[1], [0], [0], [1], [0, 0, 1, 1], [], []>} : vector<32x256xbf16>, vector<256x128xbf16>, vector<32x128xf32> -> vector<32x128xf32>
    %3 = vector.extract_strided_slice %2 {offsets = [0, 0], sizes = [32, 32], strides = [1, 1]} : vector<32x128xf32> to vector<32x32xf32>
    %4 = vector.extract_strided_slice %2 {offsets = [0, 32], sizes = [32, 32], strides = [1, 1]} : vector<32x128xf32> to vector<32x32xf32>
    %5 = arith.maximumf %3, %4 : vector<32x32xf32>
    %6 = vector.extract_strided_slice %2 {offsets = [0, 64], sizes = [32, 32], strides = [1, 1]} : vector<32x128xf32> to vector<32x32xf32>
    %7 = vector.extract_strided_slice %2 {offsets = [0, 96], sizes = [32, 32], strides = [1, 1]} : vector<32x128xf32> to vector<32x32xf32>
    %8 = arith.maximumf %6, %7 : vector<32x32xf32>
    %9 = arith.maximumf %5, %8 : vector<32x32xf32>
    %c0_3 = arith.constant 0 : index
    %c0_4 = arith.constant 0 : index
    %10 = vector.load %arg3[%c0_3, %c0_4] : memref<1x32xf32, #tpu.memory_space<vmem>>, vector<1x32xf32>
    %11 = vector.broadcast %10 : vector<1x32xf32> to vector<32x32xf32>
    %12 = arith.addf %9, %11 : vector<32x32xf32>
    %cst_5 = arith.constant 0.000000e+00 : f32
    %13 = vector.broadcast %cst_5 : f32 to vector<32x32xf32>
    %14 = arith.maximumf %12, %13 : vector<32x32xf32>
    %cst_6 = arith.constant dense<0.000000e+00> : vector<32xf32>
    %15 = vector.multi_reduction <add>, %14, %cst_6 [0] : vector<32x32xf32> to vector<32xf32>
    %16 = vector.shape_cast %15 : vector<32xf32> to vector<1x32xf32>
    %cst_7 = arith.constant 3.125000e-02 : f32
    %17 = vector.broadcast %cst_7 : f32 to vector<1x32xf32>
    %18 = arith.mulf %16, %17 : vector<1x32xf32>
    %19 = arith.mulf %14, %14 : vector<32x32xf32>
    %cst_8 = arith.constant dense<0.000000e+00> : vector<32xf32>
    %20 = vector.multi_reduction <add>, %19, %cst_8 [0] : vector<32x32xf32> to vector<32xf32>
    %21 = vector.shape_cast %20 : vector<32xf32> to vector<1x32xf32>
    %cst_9 = arith.constant 3.125000e-02 : f32
    %22 = vector.broadcast %cst_9 : f32 to vector<1x32xf32>
    %23 = arith.mulf %21, %22 : vector<1x32xf32>
    %24 = arith.mulf %18, %18 : vector<1x32xf32>
    %25 = arith.subf %23, %24 : vector<1x32xf32>
    %cst_10 = arith.constant 0.000000e+00 : f32
    %26 = vector.broadcast %cst_10 : f32 to vector<1x32xf32>
    %27 = arith.maximumf %25, %26 : vector<1x32xf32>
    %c0_11 = arith.constant 0 : index
    %c0_12 = arith.constant 0 : index
    %28 = vector.load %arg4[%c0_11, %c0_12] : memref<1x32xf32, #tpu.memory_space<vmem>>, vector<1x32xf32>
    %cst_13 = arith.constant 9.99999974E-6 : f32
    %29 = vector.broadcast %cst_13 : f32 to vector<1x32xf32>
    %30 = arith.addf %27, %29 : vector<1x32xf32>
    %31 = math.rsqrt %30 : vector<1x32xf32>
    %32 = arith.mulf %28, %31 : vector<1x32xf32>
    %33 = vector.broadcast %18 : vector<1x32xf32> to vector<32x32xf32>
    %34 = arith.subf %14, %33 : vector<32x32xf32>
    %35 = vector.broadcast %32 : vector<1x32xf32> to vector<32x32xf32>
    %36 = arith.mulf %34, %35 : vector<32x32xf32>
    %c0_14 = arith.constant 0 : index
    %c0_15 = arith.constant 0 : index
    %37 = vector.load %arg5[%c0_14, %c0_15] : memref<1x32xf32, #tpu.memory_space<vmem>>, vector<1x32xf32>
    %38 = vector.broadcast %37 : vector<1x32xf32> to vector<32x32xf32>
    %39 = arith.addf %36, %38 : vector<32x32xf32>
    %40 = arith.truncf %39 : vector<32x32xf32> to vector<32x32xbf16>
    %c0_16 = arith.constant 0 : index
    %c0_17 = arith.constant 0 : index
    %41 = vector.load %arg6[%c0_16, %c0_17] : memref<2x8xf32, #tpu.memory_space<vmem>>, vector<2x8xf32>
    %42 = arith.truncf %41 : vector<2x8xf32> to vector<2x8xbf16>
    %c0_18 = arith.constant 0 : index
    %c0_19 = arith.constant 0 : index
    %43 = vector.load %arg7[%c0_18, %c0_19] : memref<8x32xbf16, #tpu.memory_space<vmem>>, vector<8x32xbf16>
    %cst_20 = arith.constant dense<0.000000e+00> : vector<2x32xf32>
    %44 = tpu.matmul %42, %43, %cst_20 {dimension_numbers = #tpu.dot_dimension_numbers<[1], [0], [0], [1], [0, 0, 1, 1], [], []>} : vector<2x8xbf16>, vector<8x32xbf16>, vector<2x32xf32> -> vector<2x32xf32>
    %c0_21 = arith.constant 0 : index
    %c0_22 = arith.constant 0 : index
    %45 = vector.load %arg8[%c0_21, %c0_22] : memref<1x32xf32, #tpu.memory_space<vmem>>, vector<1x32xf32>
    %46 = vector.broadcast %45 : vector<1x32xf32> to vector<2x32xf32>
    %47 = arith.addf %44, %46 : vector<2x32xf32>
    %cst_23 = arith.constant 0.000000e+00 : f32
    %48 = vector.broadcast %cst_23 : f32 to vector<2x32xf32>
    %49 = arith.maximumf %47, %48 : vector<2x32xf32>
    %c0_24 = arith.constant 0 : index
    %c0_25 = arith.constant 0 : index
    %50 = vector.load %arg11[%c0_24, %c0_25] : memref<2x64xf32, #tpu.memory_space<vmem>>, vector<2x32xf32>
    tpu.vector_store %arg11[%c0_24, %c0_25], %49 {strides = array<i32>} : memref<2x64xf32, #tpu.memory_space<vmem>>, vector<2x32xf32>,
    %cst_26 = arith.constant 0.000000e+00 : f32
    %51 = vector.broadcast %cst_26 : f32 to vector<2x32xf32>
    %52 = vector.extract_strided_slice %40 {offsets = [0, 0], sizes = [2, 32], strides = [1, 1]} : vector<32x32xbf16> to vector<2x32xbf16>
    %c0_27 = arith.constant 0 : index
    %c0_28 = arith.constant 0 : index
    %c0_29 = arith.constant 0 : index
    %53 = vector.load %arg9[%c0_27, %c0_28, %c0_29] : memref<16x32x32xbf16, #tpu.memory_space<vmem>>, vector<1x32x32xbf16>
    %54 = vector.shape_cast %53 : vector<1x32x32xbf16> to vector<32x32xbf16>
    %cst_30 = arith.constant dense<0.000000e+00> : vector<2x32xf32>
    %55 = tpu.matmul %52, %54, %cst_30 {dimension_numbers = #tpu.dot_dimension_numbers<[1], [0], [0], [1], [0, 0, 1, 1], [], []>} : vector<2x32xbf16>, vector<32x32xbf16>, vector<2x32xf32> -> vector<2x32xf32>
    %56 = arith.addf %51, %55 : vector<2x32xf32>
    %57 = vector.extract_strided_slice %40 {offsets = [2, 0], sizes = [2, 32], strides = [1, 1]} : vector<32x32xbf16> to vector<2x32xbf16>
    %c1 = arith.constant 1 : index
    %c0_31 = arith.constant 0 : index
    %c0_32 = arith.constant 0 : index
    %58 = vector.load %arg9[%c1, %c0_31, %c0_32] : memref<16x32x32xbf16, #tpu.memory_space<vmem>>, vector<1x32x32xbf16>
    %59 = vector.shape_cast %58 : vector<1x32x32xbf16> to vector<32x32xbf16>
    %cst_33 = arith.constant dense<0.000000e+00> : vector<2x32xf32>
    %60 = tpu.matmul %57, %59, %cst_33 {dimension_numbers = #tpu.dot_dimension_numbers<[1], [0], [0], [1], [0, 0, 1, 1], [], []>} : vector<2x32xbf16>, vector<32x32xbf16>, vector<2x32xf32> -> vector<2x32xf32>
    %61 = arith.addf %56, %60 : vector<2x32xf32>
    %62 = vector.extract_strided_slice %40 {offsets = [4, 0], sizes = [2, 32], strides = [1, 1]} : vector<32x32xbf16> to vector<2x32xbf16>
    %c2 = arith.constant 2 : index
    %c0_34 = arith.constant 0 : index
    %c0_35 = arith.constant 0 : index
    %63 = vector.load %arg9[%c2, %c0_34, %c0_35] : memref<16x32x32xbf16, #tpu.memory_space<vmem>>, vector<1x32x32xbf16>
    %64 = vector.shape_cast %63 : vector<1x32x32xbf16> to vector<32x32xbf16>
    %cst_36 = arith.constant dense<0.000000e+00> : vector<2x32xf32>
    %65 = tpu.matmul %62, %64, %cst_36 {dimension_numbers = #tpu.dot_dimension_numbers<[1], [0], [0], [1], [0, 0, 1, 1], [], []>} : vector<2x32xbf16>, vector<32x32xbf16>, vector<2x32xf32> -> vector<2x32xf32>
    %66 = arith.addf %61, %65 : vector<2x32xf32>
    %67 = vector.extract_strided_slice %40 {offsets = [6, 0], sizes = [2, 32], strides = [1, 1]} : vector<32x32xbf16> to vector<2x32xbf16>
    %c3 = arith.constant 3 : index
    %c0_37 = arith.constant 0 : index
    %c0_38 = arith.constant 0 : index
    %68 = vector.load %arg9[%c3, %c0_37, %c0_38] : memref<16x32x32xbf16, #tpu.memory_space<vmem>>, vector<1x32x32xbf16>
    %69 = vector.shape_cast %68 : vector<1x32x32xbf16> to vector<32x32xbf16>
    %cst_39 = arith.constant dense<0.000000e+00> : vector<2x32xf32>
    %70 = tpu.matmul %67, %69, %cst_39 {dimension_numbers = #tpu.dot_dimension_numbers<[1], [0], [0], [1], [0, 0, 1, 1], [], []>} : vector<2x32xbf16>, vector<32x32xbf16>, vector<2x32xf32> -> vector<2x32xf32>
    %71 = arith.addf %66, %70 : vector<2x32xf32>
    %72 = vector.extract_strided_slice %40 {offsets = [8, 0], sizes = [2, 32], strides = [1, 1]} : vector<32x32xbf16> to vector<2x32xbf16>
    %c4 = arith.constant 4 : index
    %c0_40 = arith.constant 0 : index
    %c0_41 = arith.constant 0 : index
    %73 = vector.load %arg9[%c4, %c0_40, %c0_41] : memref<16x32x32xbf16, #tpu.memory_space<vmem>>, vector<1x32x32xbf16>
    %74 = vector.shape_cast %73 : vector<1x32x32xbf16> to vector<32x32xbf16>
    %cst_42 = arith.constant dense<0.000000e+00> : vector<2x32xf32>
    %75 = tpu.matmul %72, %74, %cst_42 {dimension_numbers = #tpu.dot_dimension_numbers<[1], [0], [0], [1], [0, 0, 1, 1], [], []>} : vector<2x32xbf16>, vector<32x32xbf16>, vector<2x32xf32> -> vector<2x32xf32>
    %76 = arith.addf %71, %75 : vector<2x32xf32>
    %77 = vector.extract_strided_slice %40 {offsets = [10, 0], sizes = [2, 32], strides = [1, 1]} : vector<32x32xbf16> to vector<2x32xbf16>
    %c5 = arith.constant 5 : index
    %c0_43 = arith.constant 0 : index
    %c0_44 = arith.constant 0 : index
    %78 = vector.load %arg9[%c5, %c0_43, %c0_44] : memref<16x32x32xbf16, #tpu.memory_space<vmem>>, vector<1x32x32xbf16>
    %79 = vector.shape_cast %78 : vector<1x32x32xbf16> to vector<32x32xbf16>
    %cst_45 = arith.constant dense<0.000000e+00> : vector<2x32xf32>
    %80 = tpu.matmul %77, %79, %cst_45 {dimension_numbers = #tpu.dot_dimension_numbers<[1], [0], [0], [1], [0, 0, 1, 1], [], []>} : vector<2x32xbf16>, vector<32x32xbf16>, vector<2x32xf32> -> vector<2x32xf32>
    %81 = arith.addf %76, %80 : vector<2x32xf32>
    %82 = vector.extract_strided_slice %40 {offsets = [12, 0], sizes = [2, 32], strides = [1, 1]} : vector<32x32xbf16> to vector<2x32xbf16>
    %c6 = arith.constant 6 : index
    %c0_46 = arith.constant 0 : index
    %c0_47 = arith.constant 0 : index
    %83 = vector.load %arg9[%c6, %c0_46, %c0_47] : memref<16x32x32xbf16, #tpu.memory_space<vmem>>, vector<1x32x32xbf16>
    %84 = vector.shape_cast %83 : vector<1x32x32xbf16> to vector<32x32xbf16>
    %cst_48 = arith.constant dense<0.000000e+00> : vector<2x32xf32>
    %85 = tpu.matmul %82, %84, %cst_48 {dimension_numbers = #tpu.dot_dimension_numbers<[1], [0], [0], [1], [0, 0, 1, 1], [], []>} : vector<2x32xbf16>, vector<32x32xbf16>, vector<2x32xf32> -> vector<2x32xf32>
    %86 = arith.addf %81, %85 : vector<2x32xf32>
    %87 = vector.extract_strided_slice %40 {offsets = [14, 0], sizes = [2, 32], strides = [1, 1]} : vector<32x32xbf16> to vector<2x32xbf16>
    %c7 = arith.constant 7 : index
    %c0_49 = arith.constant 0 : index
    %c0_50 = arith.constant 0 : index
    %88 = vector.load %arg9[%c7, %c0_49, %c0_50] : memref<16x32x32xbf16, #tpu.memory_space<vmem>>, vector<1x32x32xbf16>
    %89 = vector.shape_cast %88 : vector<1x32x32xbf16> to vector<32x32xbf16>
    %cst_51 = arith.constant dense<0.000000e+00> : vector<2x32xf32>
    %90 = tpu.matmul %87, %89, %cst_51 {dimension_numbers = #tpu.dot_dimension_numbers<[1], [0], [0], [1], [0, 0, 1, 1], [], []>} : vector<2x32xbf16>, vector<32x32xbf16>, vector<2x32xf32> -> vector<2x32xf32>
    %91 = arith.addf %86, %90 : vector<2x32xf32>
    %92 = vector.extract_strided_slice %40 {offsets = [16, 0], sizes = [2, 32], strides = [1, 1]} : vector<32x32xbf16> to vector<2x32xbf16>
    %c8 = arith.constant 8 : index
    %c0_52 = arith.constant 0 : index
    %c0_53 = arith.constant 0 : index
    %93 = vector.load %arg9[%c8, %c0_52, %c0_53] : memref<16x32x32xbf16, #tpu.memory_space<vmem>>, vector<1x32x32xbf16>
    %94 = vector.shape_cast %93 : vector<1x32x32xbf16> to vector<32x32xbf16>
    %cst_54 = arith.constant dense<0.000000e+00> : vector<2x32xf32>
    %95 = tpu.matmul %92, %94, %cst_54 {dimension_numbers = #tpu.dot_dimension_numbers<[1], [0], [0], [1], [0, 0, 1, 1], [], []>} : vector<2x32xbf16>, vector<32x32xbf16>, vector<2x32xf32> -> vector<2x32xf32>
    %96 = arith.addf %91, %95 : vector<2x32xf32>
    %97 = vector.extract_strided_slice %40 {offsets = [18, 0], sizes = [2, 32], strides = [1, 1]} : vector<32x32xbf16> to vector<2x32xbf16>
    %c9 = arith.constant 9 : index
    %c0_55 = arith.constant 0 : index
    %c0_56 = arith.constant 0 : index
    %98 = vector.load %arg9[%c9, %c0_55, %c0_56] : memref<16x32x32xbf16, #tpu.memory_space<vmem>>, vector<1x32x32xbf16>
    %99 = vector.shape_cast %98 : vector<1x32x32xbf16> to vector<32x32xbf16>
    %cst_57 = arith.constant dense<0.000000e+00> : vector<2x32xf32>
    %100 = tpu.matmul %97, %99, %cst_57 {dimension_numbers = #tpu.dot_dimension_numbers<[1], [0], [0], [1], [0, 0, 1, 1], [], []>} : vector<2x32xbf16>, vector<32x32xbf16>, vector<2x32xf32> -> vector<2x32xf32>
    %101 = arith.addf %96, %100 : vector<2x32xf32>
    %102 = vector.extract_strided_slice %40 {offsets = [20, 0], sizes = [2, 32], strides = [1, 1]} : vector<32x32xbf16> to vector<2x32xbf16>
    %c10 = arith.constant 10 : index
    %c0_58 = arith.constant 0 : index
    %c0_59 = arith.constant 0 : index
    %103 = vector.load %arg9[%c10, %c0_58, %c0_59] : memref<16x32x32xbf16, #tpu.memory_space<vmem>>, vector<1x32x32xbf16>
    %104 = vector.shape_cast %103 : vector<1x32x32xbf16> to vector<32x32xbf16>
    %cst_60 = arith.constant dense<0.000000e+00> : vector<2x32xf32>
    %105 = tpu.matmul %102, %104, %cst_60 {dimension_numbers = #tpu.dot_dimension_numbers<[1], [0], [0], [1], [0, 0, 1, 1], [], []>} : vector<2x32xbf16>, vector<32x32xbf16>, vector<2x32xf32> -> vector<2x32xf32>
    %106 = arith.addf %101, %105 : vector<2x32xf32>
    %107 = vector.extract_strided_slice %40 {offsets = [22, 0], sizes = [2, 32], strides = [1, 1]} : vector<32x32xbf16> to vector<2x32xbf16>
    %c11 = arith.constant 11 : index
    %c0_61 = arith.constant 0 : index
    %c0_62 = arith.constant 0 : index
    %108 = vector.load %arg9[%c11, %c0_61, %c0_62] : memref<16x32x32xbf16, #tpu.memory_space<vmem>>, vector<1x32x32xbf16>
    %109 = vector.shape_cast %108 : vector<1x32x32xbf16> to vector<32x32xbf16>
    %cst_63 = arith.constant dense<0.000000e+00> : vector<2x32xf32>
    %110 = tpu.matmul %107, %109, %cst_63 {dimension_numbers = #tpu.dot_dimension_numbers<[1], [0], [0], [1], [0, 0, 1, 1], [], []>} : vector<2x32xbf16>, vector<32x32xbf16>, vector<2x32xf32> -> vector<2x32xf32>
    %111 = arith.addf %106, %110 : vector<2x32xf32>
    %112 = vector.extract_strided_slice %40 {offsets = [24, 0], sizes = [2, 32], strides = [1, 1]} : vector<32x32xbf16> to vector<2x32xbf16>
    %c12 = arith.constant 12 : index
    %c0_64 = arith.constant 0 : index
    %c0_65 = arith.constant 0 : index
    %113 = vector.load %arg9[%c12, %c0_64, %c0_65] : memref<16x32x32xbf16, #tpu.memory_space<vmem>>, vector<1x32x32xbf16>
    %114 = vector.shape_cast %113 : vector<1x32x32xbf16> to vector<32x32xbf16>
    %cst_66 = arith.constant dense<0.000000e+00> : vector<2x32xf32>
    %115 = tpu.matmul %112, %114, %cst_66 {dimension_numbers = #tpu.dot_dimension_numbers<[1], [0], [0], [1], [0, 0, 1, 1], [], []>} : vector<2x32xbf16>, vector<32x32xbf16>, vector<2x32xf32> -> vector<2x32xf32>
    %116 = arith.addf %111, %115 : vector<2x32xf32>
    %117 = vector.extract_strided_slice %40 {offsets = [26, 0], sizes = [2, 32], strides = [1, 1]} : vector<32x32xbf16> to vector<2x32xbf16>
    %c13 = arith.constant 13 : index
    %c0_67 = arith.constant 0 : index
    %c0_68 = arith.constant 0 : index
    %118 = vector.load %arg9[%c13, %c0_67, %c0_68] : memref<16x32x32xbf16, #tpu.memory_space<vmem>>, vector<1x32x32xbf16>
    %119 = vector.shape_cast %118 : vector<1x32x32xbf16> to vector<32x32xbf16>
    %cst_69 = arith.constant dense<0.000000e+00> : vector<2x32xf32>
    %120 = tpu.matmul %117, %119, %cst_69 {dimension_numbers = #tpu.dot_dimension_numbers<[1], [0], [0], [1], [0, 0, 1, 1], [], []>} : vector<2x32xbf16>, vector<32x32xbf16>, vector<2x32xf32> -> vector<2x32xf32>
    %121 = arith.addf %116, %120 : vector<2x32xf32>
    %122 = vector.extract_strided_slice %40 {offsets = [28, 0], sizes = [2, 32], strides = [1, 1]} : vector<32x32xbf16> to vector<2x32xbf16>
    %c14 = arith.constant 14 : index
    %c0_70 = arith.constant 0 : index
    %c0_71 = arith.constant 0 : index
    %123 = vector.load %arg9[%c14, %c0_70, %c0_71] : memref<16x32x32xbf16, #tpu.memory_space<vmem>>, vector<1x32x32xbf16>
    %124 = vector.shape_cast %123 : vector<1x32x32xbf16> to vector<32x32xbf16>
    %cst_72 = arith.constant dense<0.000000e+00> : vector<2x32xf32>
    %125 = tpu.matmul %122, %124, %cst_72 {dimension_numbers = #tpu.dot_dimension_numbers<[1], [0], [0], [1], [0, 0, 1, 1], [], []>} : vector<2x32xbf16>, vector<32x32xbf16>, vector<2x32xf32> -> vector<2x32xf32>
    %126 = arith.addf %121, %125 : vector<2x32xf32>
    %127 = vector.extract_strided_slice %40 {offsets = [30, 0], sizes = [2, 32], strides = [1, 1]} : vector<32x32xbf16> to vector<2x32xbf16>
    %c15 = arith.constant 15 : index
    %c0_73 = arith.constant 0 : index
    %c0_74 = arith.constant 0 : index
    %128 = vector.load %arg9[%c15, %c0_73, %c0_74] : memref<16x32x32xbf16, #tpu.memory_space<vmem>>, vector<1x32x32xbf16>
    %129 = vector.shape_cast %128 : vector<1x32x32xbf16> to vector<32x32xbf16>
    %cst_75 = arith.constant dense<0.000000e+00> : vector<2x32xf32>
    %130 = tpu.matmul %127, %129, %cst_75 {dimension_numbers = #tpu.dot_dimension_numbers<[1], [0], [0], [1], [0, 0, 1, 1], [], []>} : vector<2x32xbf16>, vector<32x32xbf16>, vector<2x32xf32> -> vector<2x32xf32>
    %131 = arith.addf %126, %130 : vector<2x32xf32>
    %c0_76 = arith.constant 0 : index
    %c0_77 = arith.constant 0 : index
    %132 = vector.load %arg10[%c0_76, %c0_77] : memref<1x32xf32, #tpu.memory_space<vmem>>, vector<1x32xf32>
    %133 = vector.broadcast %132 : vector<1x32xf32> to vector<2x32xf32>
    %134 = arith.addf %131, %133 : vector<2x32xf32>
    %c0_78 = arith.constant 0 : index
    %c32 = arith.constant 32 : index
    %135 = vector.load %arg11[%c0_78, %c32] : memref<2x64xf32, #tpu.memory_space<vmem>>, vector<2x32xf32>
    tpu.vector_store %arg11[%c0_78, %c32], %134 {strides = array<i32>} : memref<2x64xf32, #tpu.memory_space<vmem>>, vector<2x32xf32>,
    return
  }
  func.func @transform_0(%arg0: i32) -> (i32, i32) {
    %c0_i32 = arith.constant 0 : i32
    %c0_i32_0 = arith.constant 0 : i32
    %c0_i32_1 = arith.constant 0 : i32
    return %c0_i32, %c0_i32_0 : i32, i32
  }
  func.func @transform_1(%arg0: i32) -> (i32, i32) {
    %c0_i32 = arith.constant 0 : i32
    %c0_i32_0 = arith.constant 0 : i32
    %c0_i32_1 = arith.constant 0 : i32
    return %c0_i32, %c0_i32_0 : i32, i32
  }
  func.func @transform_2(%arg0: i32) -> (i32, i32) {
    %c0_i32 = arith.constant 0 : i32
    %c0_i32_0 = arith.constant 0 : i32
    %c0_i32_1 = arith.constant 0 : i32
    return %c0_i32, %c0_i32_0 : i32, i32
  }
  func.func @transform_3(%arg0: i32) -> (i32, i32) {
    %c0_i32 = arith.constant 0 : i32
    %c0_i32_0 = arith.constant 0 : i32
    %c0_i32_1 = arith.constant 0 : i32
    return %c0_i32, %c0_i32_0 : i32, i32
  }
  func.func @transform_4(%arg0: i32) -> (i32, i32) {
    %c0_i32 = arith.constant 0 : i32
    %c0_i32_0 = arith.constant 0 : i32
    %c0_i32_1 = arith.constant 0 : i32
    return %c0_i32, %c0_i32_0 : i32, i32
  }
  func.func @transform_5(%arg0: i32) -> (i32, i32) {
    %c0_i32 = arith.constant 0 : i32
    %c0_i32_0 = arith.constant 0 : i32
    %c0_i32_1 = arith.constant 0 : i32
    return %c0_i32, %c0_i32_0 : i32, i32
  }
  func.func @transform_6(%arg0: i32) -> (i32, i32) {
    %c0_i32 = arith.constant 0 : i32
    %c0_i32_0 = arith.constant 0 : i32
    %c0_i32_1 = arith.constant 0 : i32
    return %c0_i32, %c0_i32_0 : i32, i32
  }
  func.func @transform_7(%arg0: i32) -> (i32, i32) {
    %c0_i32 = arith.constant 0 : i32
    %c0_i32_0 = arith.constant 0 : i32
    %c0_i32_1 = arith.constant 0 : i32
    return %c0_i32, %c0_i32_0 : i32, i32
  }
  func.func @transform_8(%arg0: i32) -> (i32, i32, i32) {
    %c0_i32 = arith.constant 0 : i32
    %c0_i32_0 = arith.constant 0 : i32
    %c0_i32_1 = arith.constant 0 : i32
    %c0_i32_2 = arith.constant 0 : i32
    return %c0_i32, %c0_i32_0, %c0_i32_1 : i32, i32, i32
  }
  func.func @transform_9(%arg0: i32) -> (i32, i32) {
    %c0_i32 = arith.constant 0 : i32
    %c0_i32_0 = arith.constant 0 : i32
    %c0_i32_1 = arith.constant 0 : i32
    return %c0_i32, %c0_i32_0 : i32, i32
  }
  func.func @transform_10(%arg0: i32) -> (i32, i32) {
    %c0_i32 = arith.constant 0 : i32
    %c0_i32_0 = arith.constant 0 : i32
    %c0_i32_1 = arith.constant 0 : i32
    return %c0_i32, %c0_i32_0 : i32, i32
  }
}

</mosaic_0001>

<bundles_post_ra>
// kernel: backbones_forward.2
= control target key start
LH: loop header
LB: loop body
LE: loop exit
PB: predicated region body
PF: predicated region fallthrough
CT: control target
= control target key end

     0   :  { %vm101_vm0 = vcmask 392192   ;;  %s775_s14 = smov 112   ;;  %vm422_vm1 = vcmask 130048   ;;  %vm647_vm2 = vcmask 125952   ;;  %s1151_s1 = inlined_call_operand.vmem [shape: bf16[48,64], index: 1, kind: input, shape index: {}]   ;;  %s1152_s0 = inlined_call_operand.vmem [shape: bf16[128,48], index: 0, kind: input, shape index: {}]   ;;  %s1153_s2 = inlined_call_operand.vmem [shape: f32[1,16], index: 2, kind: input, shape index: {}]   ;;  %s1154_s3 = inlined_call_operand.vmem [shape: f32[1,16], index: 3, kind: input, shape index: {}]   ;;  %s1155_s4 = inlined_call_operand.vmem [shape: f32[1,16], index: 4, kind: input, shape index: {}]   ;;  %s1156_s5 = inlined_call_operand.vmem [shape: bf16[128,16], index: 5, kind: output, shape index: {}]  }
   0x1   :  { %v762_v0 = vld [vmem:[%s1151_s1 + $0x10] sm:$0xff]   ;;  %v763_v1 = vld [vmem:[%s1151_s1 + $0x8] sm:$0xff]   ;;  %v765_v2 = vld [vmem:[%s1152_s0] sm:$0xff]  }
   0x2   :  { %732 = vmatprep.subr.bf16.mxu0 %v762_v0  ;;  %754 = vmatprep.subr.bf16.mxu1 %v762_v0  ;;  %v764_v3 = vld [vmem:[%s1151_s1] sm:$0xff]   ;;  %v766_v5 = vld [vmem:[%s1152_s0 + $0x8] sm:$0xff]   ;;  %v767_v7 = vld [vmem:[%s1152_s0 + $0x10] sm:$0xff]  }
   0x3   :  { %733 = vmatpush3.bf16.msra.mxu0 %v762_v0  ;;  %757 = vmatpush3.bf16.msra.mxu1 %v762_v0  ;;  %v769_v4 = vld [vmem:[%s1152_s0 + $0x20] sm:$0xff]   ;;  %v770_v6 = vld [vmem:[%s1152_s0 + $0x28] sm:$0xff]   ;;  %v771_v8 = vld [vmem:[%s1152_s0 + $0x30] sm:$0xff]  }
   0x4   :  { %734 = vmatprep.subr.bf16.mxu0 %v763_v1  ;;  %755 = vmatprep.subr.bf16.mxu1 %v763_v1  ;;  %v768_v9 = vld [vmem:[%s1152_s0 + $0x18] sm:$0xff]   ;;  %v922_v59 = vld [vmem:[%s1153_s2] ss:$0 sm:$0xff] }
   0x5   :  { %738 = vmatprep.mubr.msk.bf16.mxu0 %vm101_vm0, %v765_v2  ;;  %746 = vmatprep.mubr.msk.bf16.mxu1 %vm101_vm0, %v769_v4  ;;  %v772_v10 = vld [vmem:[%s1152_s0 + $0x38] sm:$0xff]   ;;  %s776_s0 = smov 96  }
   0x7   :  { %735 = vmatpush3.bf16.msra.mxu0 %v763_v1  ;;  %758 = vmatpush3.bf16.msra.mxu1 %v763_v1 }
   0x8   :  { %736 = vmatprep.subr.bf16.mxu0 %v764_v3  ;;  %756 = vmatprep.subr.bf16.mxu1 %v764_v3 }
   0xb   :  { %737 = vmatpush3.bf16.msra.mxu0 %v764_v3  ;;  %759 = vmatpush3.bf16.msra.mxu1 %v764_v3 }
   0xe   :  { %739 = vmatmul.mubr.msk.bf16.vlgmr.msra.gmra.mxu0 %vm101_vm0, %v766_v5  ;;  %747 = vmatmul.mubr.msk.bf16.vlgmr.msra.gmra.mxu1 %vm101_vm0, %v770_v6 }
   0xf   :  { %742 = vmatprep.mubr.msk.bf16.mxu0 %vm101_vm0, %v767_v7  ;;  %750 = vmatprep.mubr.msk.bf16.mxu1 %vm101_vm0, %v771_v8 }
  0x16   :  { %743 = vmatmul.mubr.msk.bf16.gmra.mxu0 %vm101_vm0, %v768_v9  ;;  %751 = vmatmul.mubr.msk.bf16.gmra.mxu1 %vm101_vm0, %v772_v10 }
  0xce   :  { %v740_v11 = vpop.f32.mrf.mxu0  ;;  %v748_v13 = vpop.f32.mrf.mxu1 }
  0xcf   :  { %243 = vrot.lane.b32.xlu1 %v740_v11, %s775_s14 }
  0xd0   :  { %v160_v12 = vpop.f32.mrf.mxu0  ;;  %v192_v16 = vpop.f32.mrf.mxu1 }
  0xd1   :  { %239 = vrot.lane.b32.xlu0 %v160_v12, %s775_s14 }
  0xd2   :  { %v741_v14 = vpop.f32.mrf.mxu0  ;;  %v749_v19 = vpop.f32.mrf.mxu1 }
  0xd3   :  { %245 = vrot.lane.b32.xlu1 %v741_v14, %s775_s14 }
  0xd4   :  { %v163_v15 = vpop.f32.mrf.mxu0  ;;  %v195_v22 = vpop.f32.mrf.mxu1 }
  0xd5   :  { %241 = vrot.lane.b32.xlu0 %v163_v15, %s775_s14 }
  0xd6   :  { %v744_v17 = vpop.f32.mrf.mxu0  ;;  %v752_v23 = vpop.f32.mrf.mxu1 }
  0xd8   :  { %v176_v18 = vpop.f32.mrf.mxu0  ;;  %v208_v24 = vpop.f32.mrf.mxu1 }
  0xd9   :  { %247 = vrot.lane.b32.xlu0 %v176_v18, %s775_s14 }
  0xda   :  { %v745_v20 = vpop.f32.mrf.mxu0  ;;  %v753_v25 = vpop.f32.mrf.mxu1 }
  0xdc   :  { %v179_v21 = vpop.f32.mrf.mxu0  ;;  %v211_v26 = vpop.f32.mrf.mxu1 }
  0xdd   :  { %251 = vrot.lane.b32.xlu0 %v744_v17, %s775_s14  ;;  %249 = vrot.lane.b32.xlu1 %v179_v21, %s775_s14 }
  0xe1   :  { %255 = vrot.lane.b32.xlu0 %v192_v16, %s775_s14  ;;  %253 = vrot.lane.b32.xlu1 %v745_v20, %s775_s14 }
  0xe5   :  { %259 = vrot.lane.b32.xlu0 %v748_v13, %s775_s14  ;;  %257 = vrot.lane.b32.xlu1 %v195_v22, %s775_s14 }
  0xe9   :  { %263 = vrot.lane.b32.xlu0 %v208_v24, %s775_s14  ;;  %261 = vrot.lane.b32.xlu1 %v749_v19, %s775_s14 }
  0xed   :  { %267 = vrot.lane.b32.xlu0 %v752_v23, %s775_s14  ;;  %265 = vrot.lane.b32.xlu1 %v211_v26, %s775_s14 }
  0xf1   :  { %269 = vrot.lane.b32.xlu1 %v753_v25, %s775_s14 }
 0x141   :  { %v244_v27 = vpop.permute.xlu1 %243 }
 0x142   :  { %v289_v31 = vmax.f32 %v740_v11, %v244_v27 }
 0x143   :  { %v240_v28 = vpop.permute.xlu0 %239 }
 0x144   :  { %v287_v29 = vmax.f32 %v160_v12, %v240_v28 }
 0x145   :  { %v246_v33 = vpop.permute.xlu1 %245 }
 0x146   :  { %319 = vrot.lane.b32.xlu0 %v287_v29, %s776_s0  ;;  %v867_v35 = vmax.f32 %v741_v14, %v246_v33 }
 0x147   :  { %v242_v30 = vpop.permute.xlu0 %241 }
 0x148   :  { %v288_v32 = vmax.f32 %v163_v15, %v242_v30 }
 0x14a   :  { %323 = vrot.lane.b32.xlu0 %v289_v31, %s776_s0  ;;  %321 = vrot.lane.b32.xlu1 %v288_v32, %s776_s0 }
 0x14b   :  { %v248_v34 = vpop.permute.xlu0 %247 }
 0x14c   :  { %v869_v36 = vmax.f32 %v176_v18, %v248_v34 }
 0x14e   :  { %327 = vrot.lane.b32.xlu0 %v869_v36, %s776_s0  ;;  %325 = vrot.lane.b32.xlu1 %v867_v35, %s776_s0 }
 0x14f   :  { %v252_v37 = vpop.permute.xlu0 %251  ;;  %v250_v38 = vpop.permute.xlu1 %249 }
 0x150   :  { %v875_v39 = vmax.f32 %v744_v17, %v252_v37  ;;  %v877_v40 = vmax.f32 %v179_v21, %v250_v38 }
 0x152   :  { %331 = vrot.lane.b32.xlu0 %v875_v39, %s776_s0  ;;  %329 = vrot.lane.b32.xlu1 %v877_v40, %s776_s0 }
 0x153   :  { %v256_v41 = vpop.permute.xlu0 %255  ;;  %v254_v42 = vpop.permute.xlu1 %253 }
 0x154   :  { %v883_v43 = vmax.f32 %v192_v16, %v256_v41  ;;  %v885_v44 = vmax.f32 %v745_v20, %v254_v42 }
 0x156   :  { %335 = vrot.lane.b32.xlu0 %v883_v43, %s776_s0  ;;  %333 = vrot.lane.b32.xlu1 %v885_v44, %s776_s0 }
 0x157   :  { %v260_v45 = vpop.permute.xlu0 %259  ;;  %v258_v46 = vpop.permute.xlu1 %257 }
 0x158   :  { %v891_v47 = vmax.f32 %v748_v13, %v260_v45  ;;  %v893_v48 = vmax.f32 %v195_v22, %v258_v46 }
 0x15a   :  { %339 = vrot.lane.b32.xlu0 %v891_v47, %s776_s0  ;;  %337 = vrot.lane.b32.xlu1 %v893_v48, %s776_s0 }
 0x15b   :  { %v264_v49 = vpop.permute.xlu0 %263  ;;  %v262_v50 = vpop.permute.xlu1 %261 }
 0x15c   :  { %v899_v51 = vmax.f32 %v208_v24, %v264_v49  ;;  %v901_v52 = vmax.f32 %v749_v19, %v262_v50 }
 0x15e   :  { %343 = vrot.lane.b32.xlu0 %v899_v51, %s776_s0  ;;  %341 = vrot.lane.b32.xlu1 %v901_v52, %s776_s0 }
 0x15f   :  { %v268_v53 = vpop.permute.xlu0 %267  ;;  %v266_v54 = vpop.permute.xlu1 %265 }
 0x160   :  { %v907_v55 = vmax.f32 %v752_v23, %v268_v53  ;;  %v909_v56 = vmax.f32 %v211_v26, %v266_v54 }
 0x162   :  { %347 = vrot.lane.b32.xlu0 %v907_v55, %s776_s0  ;;  %345 = vrot.lane.b32.xlu1 %v909_v56, %s776_s0 }
 0x163   :  { %v270_v57 = vpop.permute.xlu1 %269 }
 0x164   :  { %v915_v58 = vmax.f32 %v753_v25, %v270_v57 }
 0x166   :  { %349 = vrot.lane.b32.xlu1 %v915_v58, %s776_s0 }
 0x1b8   :  { %v320_v60 = vpop.permute.xlu0 %319 }
 0x1b9   :  { %v367_v61 = vmax.f32 %v287_v29, %v320_v60 }
 0x1bb   :  { %v390_v62 = vadd.f32 %v922_v59, %v367_v61 }
 0x1bc   :  { %v324_v63 = vpop.permute.xlu0 %323  ;;  %v322_v0 = vpop.permute.xlu1 %321 }
 0x1bd   :  { %v925_v1 = vmax.f32 %v390_v62, 0.0  ;;  %v369_v2 = vmax.f32 %v289_v31, %v324_v63  ;;  %v368_v3 = vmax.f32 %v288_v32, %v322_v0 }
 0x1bf   :  { %v392_v4 = vadd.f32 %v922_v59, %v369_v2  ;;  %v391_v5 = vadd.f32 %v922_v59, %v368_v3  ;;  %v461_v6 = vmul.f32 %v925_v1, %v925_v1  ;;  %v423_v13 = vsel %vm422_vm1, %v925_v1, 0.0 }
 0x1c0   :  { %v328_v7 = vpop.permute.xlu0 %327  ;;  %v326_v8 = vpop.permute.xlu1 %325 }
 0x1c1   :  { %v931_v9 = vmax.f32 %v392_v4, 0.0  ;;  %v933_v10 = vmax.f32 %v391_v5, 0.0  ;;  %v371_v11 = vmax.f32 %v869_v36, %v328_v7  ;;  %v370_v12 = vmax.f32 %v867_v35, %v326_v8 }
 0x1c2   :  { %v477_v17 = vsel %vm422_vm1, %v461_v6, 0.0 }
 0x1c3   :  { %v463_v14 = vmul.f32 %v931_v9, %v931_v9  ;;  %v424_v15 = vsel %vm422_vm1, %v933_v10, 0.0  ;;  %v462_v16 = vmul.f32 %v933_v10, %v933_v10  ;;  %v394_v19 = vadd.f32 %v922_v59, %v371_v11 }
 0x1c4   :  { %v425_v18 = vadd.f32 %v424_v15, %v423_v13  ;;  %v393_v20 = vadd.f32 %v922_v59, %v370_v12  ;;  %v332_v21 = vpop.permute.xlu0 %331  ;;  %v330_v22 = vpop.permute.xlu1 %329  ;;  %v426_v23 = vsel %vm422_vm1, %v931_v9, 0.0 }
 0x1c5   :  { %v478_v24 = vsel %vm422_vm1, %v462_v16, 0.0  ;;  %v373_v25 = vmax.f32 %v875_v39, %v332_v21  ;;  %v372_v26 = vmax.f32 %v877_v40, %v330_v22  ;;  %v953_v28 = vmax.f32 %v394_v19, 0.0 }
 0x1c6   :  { %v479_v27 = vadd.f32 %v478_v24, %v477_v17  ;;  %v427_v29 = vadd.f32 %v426_v23, %v425_v18  ;;  %v955_v30 = vmax.f32 %v393_v20, 0.0  ;;  %v480_v31 = vsel %vm422_vm1, %v463_v14, 0.0 }
 0x1c7   :  { %v396_v32 = vadd.f32 %v922_v59, %v373_v25  ;;  %v395_v33 = vadd.f32 %v922_v59, %v372_v26  ;;  %v465_v34 = vmul.f32 %v953_v28, %v953_v28  ;;  %v430_v45 = vsel %vm422_vm1, %v953_v28, 0.0 }
 0x1c8   :  { %v481_v35 = vadd.f32 %v480_v31, %v479_v27  ;;  %v428_v36 = vsel %vm422_vm1, %v955_v30, 0.0  ;;  %v336_v37 = vpop.permute.xlu0 %335  ;;  %v334_v38 = vpop.permute.xlu1 %333  ;;  %v464_v40 = vmul.f32 %v955_v30, %v955_v30 }
 0x1c9   :  { %v429_v39 = vadd.f32 %v428_v36, %v427_v29  ;;  %v966_v41 = vmax.f32 %v396_v32, 0.0  ;;  %v968_v42 = vmax.f32 %v395_v33, 0.0  ;;  %v375_v46 = vmax.f32 %v883_v43, %v336_v37 }
 0x1ca   :  { %v374_v49 = vmax.f32 %v885_v44, %v334_v38  ;;  %v484_v50 = vsel %vm422_vm1, %v465_v34, 0.0  ;;  %v482_v53 = vsel %vm422_vm1, %v464_v40, 0.0 }
 0x1cb   :  { %v467_v54 = vmul.f32 %v966_v41, %v966_v41  ;;  %v431_v57 = vadd.f32 %v430_v45, %v429_v39  ;;  %v483_v60 = vadd.f32 %v482_v53, %v481_v35  ;;  %v432_v61 = vsel %vm422_vm1, %v968_v42, 0.0 }
 0x1cc   :  { %v466_v62 = vmul.f32 %v968_v42, %v968_v42  ;;  %v398_v63 = vadd.f32 %v922_v59, %v375_v46  ;;  %v340_v43 = vpop.permute.xlu0 %339  ;;  %v338_v0 = vpop.permute.xlu1 %337  ;;  %v434_v44 = vsel %vm422_vm1, %v966_v41, 0.0  ;;  %v397_v3 = vadd.f32 %v922_v59, %v374_v49 }
 0x1cd   :  { %v433_v2 = vadd.f32 %v432_v61, %v431_v57  ;;  %v377_v4 = vmax.f32 %v891_v47, %v340_v43  ;;  %v485_v5 = vadd.f32 %v484_v50, %v483_v60  ;;  %v376_v8 = vmax.f32 %v893_v48, %v338_v0 }
 0x1ce   :  { %v486_v6 = vsel %vm422_vm1, %v466_v62, 0.0  ;;  %v988_v7 = vmax.f32 %v398_v63, 0.0  ;;  %v991_v12 = vmax.f32 %v397_v3, 0.0  ;;  %v488_v14 = vsel %vm422_vm1, %v467_v54, 0.0 }
 0x1cf   :  { %v435_v11 = vadd.f32 %v434_v44, %v433_v2  ;;  %v400_v13 = vadd.f32 %v922_v59, %v377_v4  ;;  %v487_v15 = vadd.f32 %v486_v6, %v485_v5  ;;  %v399_v47 = vadd.f32 %v922_v59, %v376_v8 }
 0x1d0   :  { %v469_v16 = vmul.f32 %v988_v7, %v988_v7  ;;  %v344_v17 = vpop.permute.xlu0 %343  ;;  %v342_v18 = vpop.permute.xlu1 %341  ;;  %v436_v19 = vsel %vm422_vm1, %v991_v12, 0.0  ;;  %v468_v48 = vmul.f32 %v991_v12, %v991_v12  ;;  %v438_v25 = vsel %vm422_vm1, %v988_v7, 0.0 }
 0x1d1   :  { %v1002_v20 = vmax.f32 %v400_v13, 0.0  ;;  %v379_v21 = vmax.f32 %v899_v51, %v344_v17  ;;  %v489_v22 = vadd.f32 %v488_v14, %v487_v15  ;;  %v437_v23 = vadd.f32 %v436_v19, %v435_v11 }
 0x1d2   :  { %v1005_v24 = vmax.f32 %v399_v47, 0.0  ;;  %v490_v26 = vsel %vm422_vm1, %v468_v48, 0.0  ;;  %v492_v35 = vsel %vm422_vm1, %v469_v16, 0.0  ;;  %v378_v37 = vmax.f32 %v901_v52, %v342_v18 }
 0x1d3   :  { %v402_v27 = vadd.f32 %v922_v59, %v379_v21  ;;  %v491_v29 = vadd.f32 %v490_v26, %v489_v22  ;;  %v439_v31 = vadd.f32 %v438_v25, %v437_v23  ;;  %v471_v36 = vmul.f32 %v1002_v20, %v1002_v20 }
 0x1d4   :  { %v440_v32 = vsel %vm422_vm1, %v1005_v24, 0.0  ;;  %v470_v33 = vmul.f32 %v1005_v24, %v1005_v24  ;;  %v348_v51 = vpop.permute.xlu0 %347  ;;  %v346_v34 = vpop.permute.xlu1 %345  ;;  %v442_v49 = vsel %vm422_vm1, %v1002_v20, 0.0  ;;  %v401_v53 = vadd.f32 %v922_v59, %v378_v37 }
 0x1d5   :  { %v381_v38 = vmax.f32 %v907_v55, %v348_v51  ;;  %v493_v39 = vadd.f32 %v492_v35, %v491_v29  ;;  %v441_v40 = vadd.f32 %v440_v32, %v439_v31  ;;  %v380_v46 = vmax.f32 %v909_v56, %v346_v34 }
 0x1d6   :  { %v494_v45 = vsel %vm422_vm1, %v470_v33, 0.0  ;;  %v1024_v50 = vmax.f32 %v402_v27, 0.0  ;;  %v496_v61 = vsel %vm422_vm1, %v471_v36, 0.0  ;;  %v1030_v62 = vmax.f32 %v401_v53, 0.0 }
 0x1d7   :  { %v404_v54 = vadd.f32 %v922_v59, %v381_v38  ;;  %v495_v57 = vadd.f32 %v494_v45, %v493_v39  ;;  %v443_v60 = vadd.f32 %v442_v49, %v441_v40  ;;  %v403_v52 = vadd.f32 %v922_v59, %v380_v46 }
 0x1d8   :  { %v350_v55 = vpop.permute.xlu1 %349  ;;  %v473_v0 = vmul.f32 %v1024_v50, %v1024_v50  ;;  %v444_v44 = vsel %vm422_vm1, %v1030_v62, 0.0  ;;  %v472_v2 = vmul.f32 %v1030_v62, %v1030_v62  ;;  %v446_v6 = vsel %vm422_vm1, %v1024_v50, 0.0 }
 0x1d9   :  { %v382_v56 = vmax.f32 %v915_v58, %v350_v55  ;;  %v497_v63 = vadd.f32 %v496_v61, %v495_v57  ;;  %v1033_v43 = vmax.f32 %v403_v52, 0.0  ;;  %v1041_v3 = vmax.f32 %v404_v54, 0.0 }
 0x1da   :  { %v445_v4 = vadd.f32 %v444_v44, %v443_v60  ;;  %v498_v8 = vsel %vm422_vm1, %v472_v2, 0.0  ;;  %v500_v16 = vsel %vm422_vm1, %v473_v0, 0.0  ;;  %v539_v55 = vlaneseq }
 0x1db   :  { %v474_v5 = vmul.f32 %v1033_v43, %v1033_v43  ;;  %v405_v58 = vadd.f32 %v922_v59, %v382_v56  ;;  %v448_v11 = vsel %vm422_vm1, %v1033_v43, 0.0  ;;  %v499_v13 = vadd.f32 %v498_v8, %v497_v63  ;;  %v518_v56 = vld [vmem:[%s1154_s3] sm:$0x1] }
 0x1dc   :  { %v447_v14 = vadd.f32 %v446_v6, %v445_v4  ;;  %v475_v47 = vmul.f32 %v1041_v3, %v1041_v3  ;;  %v450_v48 = vsel %vm422_vm1, %v1041_v3, 0.0  ;;  %v540_v61 = vshrl.u32 %v539_v55, 7 }
 0x1dd   :  { %v1051_v15 = vmax.f32 %v405_v58, 0.0  ;;  %v502_v17 = vsel %vm422_vm1, %v474_v5, 0.0  ;;  %v501_v59 = vadd.f32 %v500_v16, %v499_v13 }
 0x1de   :  { %v449_v18 = vadd.f32 %v448_v11, %v447_v14  ;;  %v504_v25 = vsel %vm422_vm1, %v475_v47, 0.0  ;;  %v541_v63 = vsub.s32 0, %v540_v61 }
 0x1df   :  { %v476_v19 = vmul.f32 %v1051_v15, %v1051_v15  ;;  %v452_v21 = vsel %vm422_vm1, %v1051_v15, 0.0  ;;  %v503_v22 = vadd.f32 %v502_v17, %v501_v59 }
 0x1e0   :  { %v451_v23 = vadd.f32 %v450_v48, %v449_v18 }
 0x1e1   :  { %v506_v26 = vsel %vm422_vm1, %v476_v19, 0.0  ;;  %v505_v27 = vadd.f32 %v504_v25, %v503_v22 }
 0x1e2   :  { %v453_v29 = vadd.f32 %v452_v21, %v451_v23 }
 0x1e3   :  { %v507_v32 = vadd.f32 %v506_v26, %v505_v27 }
 0x1e4   :  { %v454_v31 = vrot.slane %v453_v29, 4 }
 0x1e5   :  { %v508_v51 = vrot.slane %v507_v32, 4 }
 0x1e6   :  { %v455_v33 = vadd.f32 %v454_v31, %v453_v29 }
 0x1e7   :  { %v509_v35 = vadd.f32 %v508_v51, %v507_v32 }
 0x1e8   :  { %v456_v34 = vrot.slane %v455_v33, 2 }
 0x1e9   :  { %v510_v37 = vrot.slane %v509_v35, 2 }
 0x1ea   :  { %v457_v36 = vadd.f32 %v456_v34, %v455_v33 }
 0x1eb   :  { %v511_v39 = vadd.f32 %v510_v37, %v509_v35 }
 0x1ec   :  { %v458_v38 = vrot.slane %v457_v36, 1 }
 0x1ed   :  { %v512_v45 = vrot.slane %v511_v39, 1 }
 0x1ee   :  { %v459_v40 = vadd.f32 %v458_v38, %v457_v36 }
 0x1ef   :  { %v513_v49 = vadd.f32 %v512_v45, %v511_v39 }
 0x1f0   :  { %v460_v46 = vmul.f32 0.0078125, %v459_v40 }
 0x1f1   :  { %v514_v53 = vmul.f32 0.0078125, %v513_v49 }
 0x1f2   :  { %v515_v54 = vmul.f32 %v460_v46, %v460_v46  ;;  %v522_v44 = vsub.f32 %v925_v1, %v460_v46  ;;  %v523_v2 = vsub.f32 %v933_v10, %v460_v46  ;;  %v524_v5 = vsub.f32 %v931_v9, %v460_v46 }
 0x1f3   :  { %v525_v58 = vsub.f32 %v955_v30, %v460_v46  ;;  %v526_v6 = vsub.f32 %v953_v28, %v460_v46  ;;  %v527_v8 = vsub.f32 %v968_v42, %v460_v46  ;;  %v528_v11 = vsub.f32 %v966_v41, %v460_v46 }
 0x1f4   :  { %v516_v57 = vsub.f32 %v514_v53, %v515_v54  ;;  %v529_v13 = vsub.f32 %v991_v12, %v460_v46  ;;  %v530_v14 = vsub.f32 %v988_v7, %v460_v46  ;;  %v531_v16 = vsub.f32 %v1005_v24, %v460_v46 }
 0x1f5   :  { %v532_v1 = vsub.f32 %v1002_v20, %v460_v46  ;;  %v533_v10 = vsub.f32 %v1030_v62, %v460_v46  ;;  %v534_v9 = vsub.f32 %v1024_v50, %v460_v46  ;;  %v535_v28 = vsub.f32 %v1033_v43, %v460_v46  ;;  %v688_v20 = vld [vmem:[%s1155_s4] ss:$0 sm:$0xff] }
 0x1f6   :  { %v517_v60 = vmax.f32 %v516_v57, 0.0  ;;  %v536_v30 = vsub.f32 %v1041_v3, %v460_v46  ;;  %v537_v41 = vsub.f32 %v1051_v15, %v460_v46 }
 0x1f8   :  { %v519_v52 = vadd.f32 1e-05, %v517_v60 }
 0x1fa   :  { %773 = vrsqrt.f32 %v519_v52 }
 0x207   :  { %v774_v0 = vpop.eup %773 }
 0x208   :  { %v521_v4 = vmul.f32 %v774_v0, %v518_v56 }
 0x20a   :  { %v542_v47 = vrot.slane %v521_v4, %v541_v63 }
 0x20c   :  { %v544_v42 = vmul.f32 %v542_v47, %v522_v44  ;;  %v545_v12 = vmul.f32 %v542_v47, %v523_v2  ;;  %v546_v17 = vmul.f32 %v542_v47, %v524_v5  ;;  %v547_v7 = vmul.f32 %v542_v47, %v525_v58 }
 0x20d   :  { %v548_v24 = vmul.f32 %v542_v47, %v526_v6  ;;  %v549_v62 = vmul.f32 %v542_v47, %v527_v8  ;;  %v550_v59 = vmul.f32 %v542_v47, %v528_v11  ;;  %v551_v18 = vmul.f32 %v542_v47, %v529_v13 }
 0x20e   :  { %v552_v19 = vmul.f32 %v542_v47, %v530_v14  ;;  %v553_v50 = vmul.f32 %v542_v47, %v531_v16  ;;  %v554_v48 = vmul.f32 %v542_v47, %v532_v1  ;;  %v555_v43 = vmul.f32 %v542_v47, %v533_v10 }
 0x20f   :  { %v556_v21 = vmul.f32 %v542_v47, %v534_v9  ;;  %v557_v3 = vmul.f32 %v542_v47, %v535_v28  ;;  %v558_v22 = vmul.f32 %v542_v47, %v536_v30  ;;  %v559_v15 = vmul.f32 %v542_v47, %v537_v41 }
 0x210   :  { %v567_v23 = vadd.f32 %v688_v20, %v544_v42  ;;  %v568_v25 = vadd.f32 %v688_v20, %v545_v12  ;;  %v569_v26 = vadd.f32 %v688_v20, %v546_v17  ;;  %v570_v27 = vadd.f32 %v688_v20, %v547_v7 }
 0x211   :  { %v571_v29 = vadd.f32 %v688_v20, %v548_v24  ;;  %v572_v31 = vadd.f32 %v688_v20, %v549_v62  ;;  %v573_v32 = vadd.f32 %v688_v20, %v550_v59  ;;  %v574_v33 = vadd.f32 %v688_v20, %v551_v18 }
 0x212   :  { %v575_v51 = vadd.f32 %v688_v20, %v552_v19  ;;  %v576_v34 = vadd.f32 %v688_v20, %v553_v50  ;;  %v577_v35 = vadd.f32 %v688_v20, %v554_v48  ;;  %v578_v36 = vadd.f32 %v688_v20, %v555_v43 }
 0x213   :  { %v579_v37 = vadd.f32 %v688_v20, %v556_v21  ;;  %v580_v38 = vadd.f32 %v688_v20, %v557_v3  ;;  %v581_v39 = vadd.f32 %v688_v20, %v558_v22  ;;  %v582_v40 = vadd.f32 %v688_v20, %v559_v15 }
 0x214   :  { %v705_v45 = vpack.c.bf16 %v567_v23, %v567_v23  ;;  %v706_v46 = vpack.c.bf16 %v568_v25, %v568_v25  ;;  %v707_v49 = vpack.c.bf16 %v569_v26, %v569_v26  ;;  %v708_v53 = vpack.c.bf16 %v570_v27, %v570_v27 }
 0x215   :  { %v709_v54 = vpack.c.bf16 %v571_v29, %v571_v29  ;;  %v710_v57 = vpack.c.bf16 %v572_v31, %v572_v31  ;;  %v711_v60 = vpack.c.bf16 %v573_v32, %v573_v32  ;;  %v712_v52 = vpack.c.bf16 %v574_v33, %v574_v33 }
 0x216   :  { %v713_v55 = vpack.c.bf16 %v575_v51, %v575_v51  ;;  %v714_v61 = vpack.c.bf16 %v576_v34, %v576_v34  ;;  %v715_v56 = vpack.c.bf16 %v577_v35, %v577_v35  ;;  %v716_v63 = vpack.c.bf16 %v578_v36, %v578_v36  ;;  %648 = vst.msk [vmem:[%s1156_s5] sm:$0xf] %vm647_vm2, %v705_v45 }
 0x217   :  { %649 = vst.msk [vmem:[%s1156_s5 + $0x4] sm:$0xf] %vm647_vm2, %v706_v46  ;;  %650 = vst.msk [vmem:[%s1156_s5 + $0x8] sm:$0xf] %vm647_vm2, %v707_v49  ;;  %v717_v0 = vpack.c.bf16 %v579_v37, %v579_v37  ;;  %v718_v44 = vpack.c.bf16 %v580_v38, %v580_v38  ;;  %v719_v2 = vpack.c.bf16 %v581_v39, %v581_v39 }
 0x218   :  { %651 = vst.msk [vmem:[%s1156_s5 + $0xc] sm:$0xf] %vm647_vm2, %v708_v53  ;;  %v720_v4 = vpack.c.bf16 %v582_v40, %v582_v40  ;;  %652 = vst.msk [vmem:[%s1156_s5 + $0x10] sm:$0xf] %vm647_vm2, %v709_v54 }
 0x219   :  { %653 = vst.msk [vmem:[%s1156_s5 + $0x14] sm:$0xf] %vm647_vm2, %v710_v57  ;;  %654 = vst.msk [vmem:[%s1156_s5 + $0x18] sm:$0xf] %vm647_vm2, %v711_v60 }
 0x21a   :  { %655 = vst.msk [vmem:[%s1156_s5 + $0x1c] sm:$0xf] %vm647_vm2, %v712_v52  ;;  %656 = vst.msk [vmem:[%s1156_s5 + $0x20] sm:$0xf] %vm647_vm2, %v713_v55 }
 0x21b   :  { %657 = vst.msk [vmem:[%s1156_s5 + $0x24] sm:$0xf] %vm647_vm2, %v714_v61  ;;  %658 = vst.msk [vmem:[%s1156_s5 + $0x28] sm:$0xf] %vm647_vm2, %v715_v56 }
 0x21c   :  { %659 = vst.msk [vmem:[%s1156_s5 + $0x2c] sm:$0xf] %vm647_vm2, %v716_v63  ;;  %660 = vst.msk [vmem:[%s1156_s5 + $0x30] sm:$0xf] %vm647_vm2, %v717_v0 }
 0x21d   :  { %661 = vst.msk [vmem:[%s1156_s5 + $0x34] sm:$0xf] %vm647_vm2, %v718_v44  ;;  %662 = vst.msk [vmem:[%s1156_s5 + $0x38] sm:$0xf] %vm647_vm2, %v719_v2 }
 0x21e   :  { %663 = vst.msk [vmem:[%s1156_s5 + $0x3c] sm:$0xf] %vm647_vm2, %v720_v4 }

// kernel: backbones_forward.3
= control target key start
LH: loop header
LB: loop body
LE: loop exit
PB: predicated region body
PF: predicated region fallthrough
CT: control target
= control target key end

     0   :  { %s2225_s0 = inlined_call_operand.vmem [shape: bf16[32,256], index: 0, kind: input, shape index: {}]   ;;  %s2226_s1 = inlined_call_operand.vmem [shape: bf16[256,128], index: 1, kind: input, shape index: {}]   ;;  %s2227_s2 = inlined_call_operand.vmem [shape: f32[1,32], index: 2, kind: input, shape index: {}]   ;;  %s2228_s3 = inlined_call_operand.vmem [shape: f32[1,32], index: 3, kind: input, shape index: {}]   ;;  %s2229_s4 = inlined_call_operand.vmem [shape: f32[1,32], index: 4, kind: input, shape index: {}]   ;;  %s2230_s5 = inlined_call_operand.vmem [shape: f32[2,8], index: 5, kind: input, shape index: {}]   ;;  %s2231_s6 = inlined_call_operand.vmem [shape: bf16[8,32], index: 6, kind: input, shape index: {}]   ;;  %s2232_s7 = inlined_call_operand.vmem [shape: f32[1,32], index: 7, kind: input, shape index: {}]   ;;  %s2233_s8 = inlined_call_operand.vmem [shape: bf16[16,32,32], index: 8, kind: input, shape index: {}]   ;;  %s2234_s9 = inlined_call_operand.vmem [shape: f32[1,32], index: 9, kind: input, shape index: {}]   ;;  %s2235_s10 = inlined_call_operand.hbm [shape: f32[2,64], index: 10, kind: output, shape index: {}]  }
   0x1   :  { %v1789_v0 = vld [vmem:[%s2226_s1 + $0x78] sm:$0xff]   ;;  %v1791_v2 = vld [vmem:[%s2226_s1 + $0x70] sm:$0xff]   ;;  %v1793_v4 = vld [vmem:[%s2226_s1 + $0x68] sm:$0xff]  }
   0x2   :  { %v1790_v1 = vld [vmem:[%s2226_s1 + $0x38] sm:$0xff]   ;;  %1571 = vmatprep.subr.bf16.mxu0 %v1789_v0  ;;  %v1792_v3 = vld [vmem:[%s2226_s1 + $0x30] sm:$0xff]   ;;  %v1794_v5 = vld [vmem:[%s2226_s1 + $0x28] sm:$0xff]  }
   0x3   :  { %1572 = vmatpush3.bf16.msra.mxu0 %v1790_v1  ;;  %v1795_v6 = vld [vmem:[%s2226_s1 + $0x60] sm:$0xff]   ;;  %v1797_v8 = vld [vmem:[%s2226_s1 + $0x58] sm:$0xff]   ;;  %v1799_v10 = vld [vmem:[%s2226_s1 + $0x50] sm:$0xff]  }
   0x4   :  { %1573 = vmatprep.subr.bf16.mxu0 %v1791_v2  ;;  %v1796_v7 = vld [vmem:[%s2226_s1 + $0x20] sm:$0xff]   ;;  %v1798_v9 = vld [vmem:[%s2226_s1 + $0x18] sm:$0xff]   ;;  %v1800_v12 = vld [vmem:[%s2226_s1 + $0x10] sm:$0xff]  }
   0x5   :  { %v1807_v11 = vld [vmem:[%s2225_s0 + $0x4] ss:$8 sps:$4 sm:$0xff]   ;;  %v1805_v17 = vld [vmem:[%s2225_s0] ss:$8 sps:$4 sm:$0xff]   ;;  %v1808_v18 = vld [vmem:[%s2225_s0 + $0x14] ss:$8 sps:$4 sm:$0xff]  }
   0x6   :  { %v1801_v13 = vld [vmem:[%s2226_s1 + $0x48] sm:$0xff]   ;;  %221 = vmatprep.mubr.bf16.mxu0 %v1807_v11  ;;  %v1803_v15 = vld [vmem:[%s2226_s1 + $0x40] sm:$0xff]   ;;  %v1810_v19 = vld [vmem:[%s2225_s0 + $0x10] ss:$8 sps:$4 sm:$0xff]  }
   0x7   :  { %1574 = vmatpush3.bf16.msra.mxu0 %v1792_v3  ;;  %v1802_v14 = vld [vmem:[%s2226_s1 + $0x8] sm:$0xff]   ;;  %v1804_v16 = vld [vmem:[%s2226_s1] sm:$0xff]  }
   0x8   :  { %1575 = vmatprep.subr.bf16.mxu0 %v1793_v4 }
   0xb   :  { %1576 = vmatpush3.bf16.msra.mxu0 %v1794_v5 }
   0xc   :  { %1577 = vmatprep.subr.bf16.mxu0 %v1795_v6 }
   0xf   :  { %1578 = vmatpush3.bf16.msra.mxu0 %v1796_v7 }
  0x10   :  { %1579 = vmatprep.subr.bf16.mxu0 %v1797_v8 }
  0x13   :  { %1580 = vmatpush3.bf16.msra.mxu0 %v1798_v9 }
  0x14   :  { %1581 = vmatprep.subr.bf16.mxu0 %v1799_v10 }
  0x17   :  { %1582 = vmatpush3.bf16.msra.mxu0 %v1800_v12 }
  0x18   :  { %1583 = vmatprep.subr.bf16.mxu0 %v1801_v13 }
  0x1b   :  { %1584 = vmatpush3.bf16.msra.mxu0 %v1802_v14 }
  0x1c   :  { %1585 = vmatprep.subr.bf16.mxu0 %v1803_v15 }
  0x1f   :  { %1586 = vmatpush3.bf16.msra.mxu0 %v1804_v16 }
  0x22   :  { %222 = vmatmul.mubr.bf16.vlgmr.msra.gmra.mxu0 %v1805_v17 }
  0x23   :  { %229 = vmatprep.mubr.bf16.mxu0 %v1808_v18 }
  0x24   :  { %15 = vsyncpa [#allocation3], 0  ;;  %s1867_s1 = smov 96   ;;  %s1868_s0 = smov 64   ;;  %v362_v40 = vld [vmem:[%s2231_s6] sm:$0xf] }
  0x25   :  { %vm374_vm0 = vcmask 1043456   ;;  %v1869_v41 = vmov 0.0   ;;  %v360_v43 = vld [vmem:[%s2230_s5] sm:$0x3]  ;;  %vm1870_vm1 = vmmov 0   ;;  %vm370_vm2 = vcmask 64512  }
  0x26   :  { %1649 = vmatprep.subr.bf16.mxu1 %v1869_v41  ;;  %v376_v42 = vsel %vm374_vm0, %v362_v40, 0  ;;  %1695 = vmatprep.subr.bf16.mxu0 %v1869_v41  ;;  %v361_v44 = vpack.c.bf16 %v360_v43, %v360_v43  ;;  %v1811_v45 = vld [vmem:[%s2233_s8 + $0x18] sm:$0xff]   ;;  %v1813_v47 = vld [vmem:[%s2233_s8 + $0x10] sm:$0xff]   ;;  %v1458_v51 = vld [vmem:[%s2227_s2] ss:$0 sm:$0xff]  ;;  %vm293_vm3 = vcmask 261120  }
  0x27   :  { %1650 = vmatpush3.bf16.msra.mxu1 %v376_v42  ;;  %1651 = vmatprep.mubr.msk.bf16.mxu1 %vm1870_vm1, %v1869_v41  ;;  %v1812_v46 = vld [vmem:[%s2233_s8 + $0x58] sm:$0xff]   ;;  %v1814_v48 = vld [vmem:[%s2233_s8 + $0x50] sm:$0xff]   ;;  %v329_v40 = vld [vmem:[%s2228_s3] sm:$0x1]  ;;  %vm419_vm4 = vcmask 254976   ;;  %s1872_s11 = smov [#allocation2]  }
  0x28   :  { %1655 = vmatprep.subr.bf16.mxu1 %v1869_v41  ;;  %1696 = vmatpush3.bf16.msra.mxu0 %v1812_v46  ;;  %s1430_s12 = sshll.u32 %s1872_s11, 4  ;;  %vm1422_vm5 = vcmask 517376   ;;  %s1431_s12 = int_to_ptr.vmem [resolvable:$true] %s1430_s12 }
  0x29   :  { %1697 = vmatprep.subr.bf16.mxu0 %v1869_v41  ;;  %p1850_p1 = scmp.lt.s32.totalorder %s1431_s12, %s1431_s12 }
  0x2a   :  { %230 = vmatmul.mubr.bf16.gmra.mxu0 %v1810_v19  ;;  %1652 = vmatmul.mubr.msk.bf16.vlgmr.msra.gmra.mxu1 %vm370_vm2, %v361_v44 }
  0x2b   :  { %1699 = vmatprep.mubr.msk.bf16.mxu0 %vm1870_vm1, %v1869_v41  ;;  %1659 = vmatprep.mubr.msk.bf16.mxu1 %vm1870_vm1, %v1869_v41 }
  0x2c   :  { %1656 = vmatpush3.bf16.msra.mxu1 %v1811_v45  ;;  %1698 = vmatpush3.bf16.msra.mxu0 %v1814_v48  ;;  %v1459_v48 = vld [vmem:[%s2229_s4] ss:$0 sm:$0xff]  ;;  %s1871_s4 = smov 32  }
  0x2d   :  { %1657 = vmatprep.subr.bf16.mxu1 %v1869_v41  ;;  %1711 = vmatprep.subr.bf16.mxu0 %v1869_v41 }
  0x30   :  { %1658 = vmatpush3.bf16.msra.mxu1 %v1813_v47 }
  0x31   :  { %1663 = vmatprep.subr.bf16.mxu1 %v1869_v41 }
  0xe2   :  { %v1587_v20 = vpop.f32.mrf.mxu0 }
  0xe4   :  { %v1588_v21 = vpop.f32.mrf.mxu0 }
  0xe5   :  { %v1589_v22 = vadd.f32 %v1588_v21, %v1587_v20 }
  0xe6   :  { %v1590_v23 = vpop.f32.mrf.mxu0 }
  0xe7   :  { %242 = vrot.lane.b32.xlu0 %v1589_v22, %s1867_s1 }
  0xe8   :  { %v1591_v24 = vpop.f32.mrf.mxu0 }
  0xe9   :  { %v1592_v25 = vadd.f32 %v1591_v24, %v1590_v23 }
  0xea   :  { %v1593_v26 = vpop.f32.mrf.mxu0 }
  0xeb   :  { %244 = vrot.lane.b32.xlu0 %v1592_v25, %s1867_s1 }
  0xec   :  { %v1594_v27 = vpop.f32.mrf.mxu0 }
  0xed   :  { %v1595_v28 = vadd.f32 %v1594_v27, %v1593_v26 }
  0xee   :  { %v1596_v29 = vpop.f32.mrf.mxu0 }
  0xef   :  { %246 = vrot.lane.b32.xlu1 %v1595_v28, %s1867_s1 }
  0xf0   :  { %v1597_v30 = vpop.f32.mrf.mxu0 }
  0xf1   :  { %v1598_v31 = vadd.f32 %v1597_v30, %v1596_v29 }
  0xf3   :  { %248 = vrot.lane.b32.xlu1 %v1598_v31, %s1867_s1  ;;  %s1845_s1 = scalar_lea.vmem %s1431_s12, 32 }
  0xf4   :  { %p1846_p0 = scmp.ne.s32.totalorder %s1431_s12, %s1845_s1  ;;  %p1851_p2 = scmp.lt.s32.totalorder %s1845_s1, %s1845_s1 }
  0xf6   :  { %p1852_p3 = por %p1851_p2, %p1850_p1 }
  0xf8   :  { %p1853_p4 = pnand %p1852_p3, %p1846_p0 }
 0x159   :  { %v243_v32 = vpop.permute.xlu0 %242 }
 0x15a   :  { %v254_v33 = vmax.f32 %v1589_v22, %v243_v32 }
 0x15c   :  { %262 = vrot.lane.b32.xlu0 %v254_v33, %s1868_s0 }
 0x15d   :  { %v245_v34 = vpop.permute.xlu0 %244 }
 0x15e   :  { %v255_v35 = vmax.f32 %v1592_v25, %v245_v34 }
 0x160   :  { %264 = vrot.lane.b32.xlu1 %v255_v35, %s1868_s0 }
 0x161   :  { %v247_v36 = vpop.permute.xlu1 %246 }
 0x162   :  { %v256_v37 = vmax.f32 %v1595_v28, %v247_v36 }
 0x164   :  { %266 = vrot.lane.b32.xlu0 %v256_v37, %s1868_s0 }
 0x165   :  { %v249_v38 = vpop.permute.xlu1 %248 }
 0x166   :  { %v257_v39 = vmax.f32 %v1598_v31, %v249_v38  ;;  %v338_v38 = vlaneseq }
 0x168   :  { %268 = vrot.lane.b32.xlu1 %v257_v39, %s1868_s0 }
 0x1ce   :  { %v263_v49 = vpop.permute.xlu0 %262 }
 0x1cf   :  { %v274_v50 = vmax.f32 %v254_v33, %v263_v49 }
 0x1d1   :  { %v285_v53 = vadd.f32 %v1458_v51, %v274_v50 }
 0x1d2   :  { %v265_v52 = vpop.permute.xlu1 %264 }
 0x1d3   :  { %v275_v54 = vmax.f32 %v255_v35, %v265_v52  ;;  %v289_v57 = vmax.f32 %v285_v53, 0.0 }
 0x1d5   :  { %v286_v55 = vadd.f32 %v1458_v51, %v275_v54  ;;  %v308_v63 = vmul.f32 %v289_v57, %v289_v57  ;;  %v294_v3 = vsel %vm293_vm3, %v289_v57, 0.0  ;;  %v1815_v54 = vld [vmem:[%s2233_s8 + $0x8] sm:$0xff]  }
 0x1d6   :  { %v267_v56 = vpop.permute.xlu0 %266 }
 0x1d7   :  { %v290_v58 = vmax.f32 %v286_v55, 0.0  ;;  %v276_v59 = vmax.f32 %v256_v37, %v267_v56  ;;  %v312_v9 = vsel %vm293_vm3, %v308_v63, 0.0  ;;  %v1816_v55 = vld [vmem:[%s2233_s8 + $0x78] sm:$0xff]  }
 0x1d9   :  { %v309_v60 = vmul.f32 %v290_v58, %v290_v58  ;;  %v287_v61 = vadd.f32 %v1458_v51, %v276_v59  ;;  %v295_v0 = vsel %vm293_vm3, %v290_v58, 0.0 }
 0x1da   :  { %v269_v62 = vpop.permute.xlu1 %268  ;;  %v296_v8 = vadd.f32 %v295_v0, %v294_v3  ;;  %v1819_v0 = vld [vmem:[%s2233_s8 + $0x28] sm:$0xff]  }
 0x1db   :  { %v2023_v1 = vmax.f32 %v287_v61, 0.0  ;;  %v277_v2 = vmax.f32 %v257_v39, %v269_v62  ;;  %v313_v4 = vsel %vm293_vm3, %v309_v60, 0.0  ;;  %v339_v39 = vshrl.u32 %v338_v38, 7  ;;  %v1817_v60 = vld [vmem:[%s2233_s8] sm:$0xff]   ;;  %v1818_v61 = vld [vmem:[%s2233_s8 + $0x70] sm:$0xff]  }
 0x1dc   :  { %v314_v12 = vadd.f32 %v313_v4, %v312_v9  ;;  %v1824_v9 = vld [vmem:[%s2233_s8 + $0xb8] sm:$0xff]  }
 0x1dd   :  { %v297_v5 = vsel %vm293_vm3, %v2023_v1, 0.0  ;;  %v310_v6 = vmul.f32 %v2023_v1, %v2023_v1  ;;  %v288_v7 = vadd.f32 %v1458_v51, %v277_v2  ;;  %v340_v42 = vsub.s32 0, %v339_v39 }
 0x1de   :  { %v298_v13 = vadd.f32 %v297_v5, %v296_v8  ;;  %v1821_v5 = vld [vmem:[%s2233_s8 + $0x20] sm:$0xff]   ;;  %v1823_v8 = vld [vmem:[%s2233_s8 + $0x38] sm:$0xff]  }
 0x1df   :  { %v315_v10 = vsel %vm293_vm3, %v310_v6, 0.0  ;;  %v292_v11 = vmax.f32 %v288_v7, 0.0  ;;  %v1822_v6 = vld [vmem:[%s2233_s8 + $0x90] sm:$0xff]  }
 0x1e0   :  { %v316_v16 = vadd.f32 %v315_v10, %v314_v12  ;;  %v1825_v12 = vld [vmem:[%s2233_s8 + $0x30] sm:$0xff]  }
 0x1e1   :  { %v299_v14 = vsel %vm293_vm3, %v292_v11, 0.0  ;;  %v311_v15 = vmul.f32 %v292_v11, %v292_v11 }
 0x1e2   :  { %v300_v17 = vadd.f32 %v299_v14, %v298_v13  ;;  %v1826_v13 = vld [vmem:[%s2233_s8 + $0xb0] sm:$0xff]   ;;  %v1827_v14 = vld [vmem:[%s2233_s8 + $0x48] sm:$0xff]  }
 0x1e3   :  { %v317_v18 = vsel %vm293_vm3, %v311_v15, 0.0  ;;  %v1828_v15 = vld [vmem:[%s2233_s8 + $0xd8] sm:$0xff]  }
 0x1e4   :  { %v301_v19 = vrot.slane %v300_v17, 4  ;;  %v318_v20 = vadd.f32 %v317_v18, %v316_v16  ;;  %v1829_v18 = vld [vmem:[%s2233_s8 + $0x40] sm:$0xff]  }
 0x1e6   :  { %v302_v21 = vadd.f32 %v301_v19, %v300_v17  ;;  %v319_v22 = vrot.slane %v318_v20, 4  ;;  %v1830_v19 = vld [vmem:[%s2233_s8 + $0xd0] sm:$0xff]  }
 0x1e8   :  { %v303_v23 = vrot.slane %v302_v21, 2  ;;  %v320_v24 = vadd.f32 %v319_v22, %v318_v20  ;;  %v1831_v20 = vld [vmem:[%s2233_s8 + $0x68] sm:$0xff]  }
 0x1ea   :  { %v304_v25 = vadd.f32 %v303_v23, %v302_v21  ;;  %v321_v26 = vrot.slane %v320_v24, 2  ;;  %v1832_v21 = vld [vmem:[%s2233_s8 + $0xf8] sm:$0xff]  }
 0x1ec   :  { %v305_v27 = vrot.slane %v304_v25, 1  ;;  %v322_v28 = vadd.f32 %v321_v26, %v320_v24  ;;  %v1833_v24 = vld [vmem:[%s2233_s8 + $0x60] sm:$0xff]   ;;  %v1835_v26 = vld [vmem:[%s2233_s8 + $0x88] sm:$0xff]  }
 0x1ee   :  { %v306_v29 = vadd.f32 %v305_v27, %v304_v25  ;;  %v323_v30 = vrot.slane %v322_v28, 1  ;;  %v1834_v25 = vld [vmem:[%s2233_s8 + $0xf0] sm:$0xff]  }
 0x1f0   :  { %v307_v31 = vmul.f32 0.03125, %v306_v29  ;;  %v324_v32 = vadd.f32 %v323_v30, %v322_v28  ;;  %v1836_v29 = vld [vmem:[%s2233_s8 + $0x80] sm:$0xff]   ;;  %v1837_v30 = vld [vmem:[%s2233_s8 + $0xa8] sm:$0xff]  }
 0x1f2   :  { %v325_v33 = vmul.f32 0.03125, %v324_v32  ;;  %v326_v34 = vmul.f32 %v307_v31, %v307_v31  ;;  %v333_v45 = vsub.f32 %v289_v57, %v307_v31  ;;  %v334_v46 = vsub.f32 %v290_v58, %v307_v31  ;;  %v1460_v32 = vld [vmem:[%s2232_s7] ss:$0 sm:$0xff] }
 0x1f3   :  { %v335_v58 = vsub.f32 %v2023_v1, %v307_v31  ;;  %v336_v59 = vsub.f32 %v292_v11, %v307_v31  ;;  %v1820_v1 = vld [vmem:[%s2233_s8 + $0x98] sm:$0xff]   ;;  %v1838_v31 = vld [vmem:[%s2233_s8 + $0xa0] sm:$0xff]  }
 0x1f4   :  { %v327_v35 = vsub.f32 %v325_v33, %v326_v34  ;;  %v412_v33 = vpop.f32.mrf.mxu1 }
 0x1f5   :  { %v413_v34 = vadd.f32 %v1460_v32, %v412_v33 }
 0x1f6   :  { %v328_v36 = vmax.f32 %v327_v35, 0.0  ;;  %v1839_v35 = vld [vmem:[%s2233_s8 + $0xc8] sm:$0xff]  }
 0x1f7   :  { %v418_v38 = vmax.f32 %v413_v34, 0.0 }
 0x1f8   :  { %v330_v37 = vadd.f32 1e-05, %v328_v36  ;;  %v1653_v36 = vpop.f32.mrf.mxu1 }
 0x1f9   :  { %420 = vst.msk [vmem:[#allocation2] sm:$0x3] %vm419_vm4, %v418_v38 }
 0x1fa   :  { %1843 = vrsqrt.f32 %v330_v37  ;;  %v415_v39 = vpop.f32.mrf.mxu1 }
 0x207   :  { %v1844_v43 = vpop.eup %1843 }
 0x208   :  { %v332_v44 = vmul.f32 %v1844_v43, %v329_v40  ;;  %v1840_v40 = vld [vmem:[%s2233_s8 + $0xc0] sm:$0xff]   ;;  %v1841_v43 = vld [vmem:[%s2233_s8 + $0xe8] sm:$0xff]  }
 0x20a   :  { %v341_v47 = vrot.slane %v332_v44, %v340_v42  ;;  %v1654_v42 = vpop.f32.mrf.mxu1 }
 0x20c   :  { %v343_v49 = vmul.f32 %v341_v47, %v333_v45  ;;  %v344_v50 = vmul.f32 %v341_v47, %v334_v46  ;;  %v345_v62 = vmul.f32 %v341_v47, %v335_v58  ;;  %v346_v63 = vmul.f32 %v341_v47, %v336_v59  ;;  %v1842_v45 = vld [vmem:[%s2233_s8 + $0xe0] sm:$0xff]  }
 0x20e   :  { %v354_v51 = vadd.f32 %v1459_v48, %v343_v49  ;;  %v355_v52 = vadd.f32 %v1459_v48, %v344_v50  ;;  %v356_v2 = vadd.f32 %v1459_v48, %v345_v62  ;;  %v357_v3 = vadd.f32 %v1459_v48, %v346_v63 }
 0x210   :  { %v2041_v53 = vpack.c.bf16 %v355_v52, %v354_v51  ;;  %v2084_v7 = vpack.c.bf16 %v357_v3, %v356_v2 }
 0x212   :  { %v431_v56 = vrot.slane %v2041_v53, 1  ;;  %v733_v57 = vrot.slane %v2041_v53, 5  ;;  %v857_v4 = vrot.slane %v2041_v53, 7  ;;  %v547_v10 = vrot.slane %v2041_v53, 2 }
 0x213   :  { %v981_v11 = vrot.slane %v2084_v7, 1  ;;  %v609_v16 = vrot.slane %v2041_v53, 3  ;;  %v1105_v17 = vrot.slane %v2084_v7, 3  ;;  %v671_v22 = vrot.slane %v2041_v53, 4 }
 0x214   :  { %1660 = vmatmul.mubr.msk.bf16.vlgmr.msra.gmra.mxu1 %vm293_vm3, %v431_v56  ;;  %1700 = vmatmul.mubr.msk.bf16.vlgmr.msra.gmra.mxu0 %vm293_vm3, %v733_v57  ;;  %v1229_v23 = vrot.slane %v2084_v7, 5  ;;  %v795_v27 = vrot.slane %v2041_v53, 6  ;;  %v1353_v28 = vrot.slane %v2084_v7, 7  ;;  %v1043_v37 = vrot.slane %v2084_v7, 2 }
 0x215   :  { %1664 = vmatpush3.bf16.msra.mxu1 %v1815_v54  ;;  %1712 = vmatpush3.bf16.msra.mxu0 %v1816_v55  ;;  %v1167_v44 = vrot.slane %v2084_v7, 4  ;;  %v1291_v46 = vrot.slane %v2084_v7, 6 }
 0x216   :  { %1665 = vmatprep.subr.bf16.mxu1 %v1869_v41  ;;  %1713 = vmatprep.subr.bf16.mxu0 %v1869_v41 }
 0x217   :  { %1667 = vmatprep.mubr.msk.bf16.mxu1 %vm1870_vm1, %v1869_v41  ;;  %1715 = vmatprep.mubr.msk.bf16.mxu0 %vm1870_vm1, %v1869_v41 }
 0x219   :  { %1666 = vmatpush3.bf16.msra.mxu1 %v1817_v60  ;;  %1714 = vmatpush3.bf16.msra.mxu0 %v1818_v61 }
 0x21a   :  { %1671 = vmatprep.subr.bf16.mxu1 %v1869_v41  ;;  %1727 = vmatprep.subr.bf16.mxu0 %v1869_v41 }
 0x21c   :  { %1668 = vmatmul.mubr.msk.bf16.vlgmr.msra.gmra.mxu1 %vm293_vm3, %v2041_v53  ;;  %1716 = vmatmul.mubr.msk.bf16.vlgmr.msra.gmra.mxu0 %vm293_vm3, %v857_v4 }
 0x21d   :  { %1672 = vmatpush3.bf16.msra.mxu1 %v1819_v0  ;;  %1728 = vmatpush3.bf16.msra.mxu0 %v1820_v1 }
 0x21e   :  { %1673 = vmatprep.subr.bf16.mxu1 %v1869_v41  ;;  %1729 = vmatprep.subr.bf16.mxu0 %v1869_v41 }
 0x21f   :  { %1675 = vmatprep.mubr.msk.bf16.mxu1 %vm1870_vm1, %v1869_v41  ;;  %1731 = vmatprep.mubr.msk.bf16.mxu0 %vm1870_vm1, %v1869_v41 }
 0x221   :  { %1674 = vmatpush3.bf16.msra.mxu1 %v1821_v5  ;;  %1730 = vmatpush3.bf16.msra.mxu0 %v1822_v6 }
 0x222   :  { %1679 = vmatprep.subr.bf16.mxu1 %v1869_v41  ;;  %1743 = vmatprep.subr.bf16.mxu0 %v1869_v41 }
 0x224   :  { %1676 = vmatmul.mubr.msk.bf16.vlgmr.msra.gmra.mxu1 %vm293_vm3, %v547_v10  ;;  %1732 = vmatmul.mubr.msk.bf16.vlgmr.msra.gmra.mxu0 %vm293_vm3, %v981_v11 }
 0x225   :  { %1680 = vmatpush3.bf16.msra.mxu1 %v1823_v8  ;;  %1744 = vmatpush3.bf16.msra.mxu0 %v1824_v9 }
 0x226   :  { %1681 = vmatprep.subr.bf16.mxu1 %v1869_v41  ;;  %1745 = vmatprep.subr.bf16.mxu0 %v1869_v41 }
 0x227   :  { %1683 = vmatprep.mubr.msk.bf16.mxu1 %vm1870_vm1, %v1869_v41  ;;  %1747 = vmatprep.mubr.msk.bf16.mxu0 %vm1870_vm1, %v1869_v41 }
 0x229   :  { %1682 = vmatpush3.bf16.msra.mxu1 %v1825_v12  ;;  %1746 = vmatpush3.bf16.msra.mxu0 %v1826_v13 }
 0x22a   :  { %1687 = vmatprep.subr.bf16.mxu1 %v1869_v41  ;;  %1759 = vmatprep.subr.bf16.mxu0 %v1869_v41 }
 0x22c   :  { %1684 = vmatmul.mubr.msk.bf16.vlgmr.msra.gmra.mxu1 %vm293_vm3, %v609_v16  ;;  %1748 = vmatmul.mubr.msk.bf16.vlgmr.msra.gmra.mxu0 %vm293_vm3, %v1105_v17 }
 0x22d   :  { %1688 = vmatpush3.bf16.msra.mxu1 %v1827_v14  ;;  %1760 = vmatpush3.bf16.msra.mxu0 %v1828_v15 }
 0x22e   :  { %1689 = vmatprep.subr.bf16.mxu1 %v1869_v41  ;;  %1761 = vmatprep.subr.bf16.mxu0 %v1869_v41 }
 0x22f   :  { %1691 = vmatprep.mubr.msk.bf16.mxu1 %vm1870_vm1, %v1869_v41  ;;  %1763 = vmatprep.mubr.msk.bf16.mxu0 %vm1870_vm1, %v1869_v41 }
 0x231   :  { %1690 = vmatpush3.bf16.msra.mxu1 %v1829_v18  ;;  %1762 = vmatpush3.bf16.msra.mxu0 %v1830_v19 }
 0x232   :  { %1703 = vmatprep.subr.bf16.mxu1 %v1869_v41  ;;  %1775 = vmatprep.subr.bf16.mxu0 %v1869_v41 }
 0x234   :  { %1692 = vmatmul.mubr.msk.bf16.vlgmr.msra.gmra.mxu1 %vm293_vm3, %v671_v22  ;;  %1764 = vmatmul.mubr.msk.bf16.vlgmr.msra.gmra.mxu0 %vm293_vm3, %v1229_v23 }
 0x235   :  { %1704 = vmatpush3.bf16.msra.mxu1 %v1831_v20  ;;  %1776 = vmatpush3.bf16.msra.mxu0 %v1832_v21 }
 0x236   :  { %1705 = vmatprep.subr.bf16.mxu1 %v1869_v41  ;;  %1777 = vmatprep.subr.bf16.mxu0 %v1869_v41 }
 0x237   :  { %1707 = vmatprep.mubr.msk.bf16.mxu1 %vm1870_vm1, %v1869_v41  ;;  %1779 = vmatprep.mubr.msk.bf16.mxu0 %vm1870_vm1, %v1869_v41 }
 0x239   :  { %1706 = vmatpush3.bf16.msra.mxu1 %v1833_v24  ;;  %1778 = vmatpush3.bf16.msra.mxu0 %v1834_v25 }
 0x23a   :  { %1719 = vmatprep.subr.bf16.mxu1 %v1869_v41 }
 0x23c   :  { %1708 = vmatmul.mubr.msk.bf16.vlgmr.msra.gmra.mxu1 %vm293_vm3, %v795_v27  ;;  %1780 = vmatmul.mubr.msk.bf16.vlgmr.msra.gmra.mxu0 %vm293_vm3, %v1353_v28 }
 0x23d   :  { %1720 = vmatpush3.bf16.msra.mxu1 %v1835_v26  ;;  %1723 = vmatprep.mubr.msk.bf16.mxu1 %vm1870_vm1, %v1869_v41 }
 0x23e   :  { %1721 = vmatprep.subr.bf16.mxu1 %v1869_v41 }
 0x241   :  { %1722 = vmatpush3.bf16.msra.mxu1 %v1836_v29 }
 0x242   :  { %1735 = vmatprep.subr.bf16.mxu1 %v1869_v41 }
 0x244   :  { %1724 = vmatmul.mubr.msk.bf16.vlgmr.msra.gmra.mxu1 %vm293_vm3, %v2084_v7 }
 0x245   :  { %1736 = vmatpush3.bf16.msra.mxu1 %v1837_v30  ;;  %1739 = vmatprep.mubr.msk.bf16.mxu1 %vm1870_vm1, %v1869_v41 }
 0x246   :  { %1737 = vmatprep.subr.bf16.mxu1 %v1869_v41 }
 0x249   :  { %1738 = vmatpush3.bf16.msra.mxu1 %v1838_v31 }
 0x24a   :  { %1751 = vmatprep.subr.bf16.mxu1 %v1869_v41 }
 0x24c   :  { %1740 = vmatmul.mubr.msk.bf16.vlgmr.msra.gmra.mxu1 %vm293_vm3, %v1043_v37 }
 0x24d   :  { %1752 = vmatpush3.bf16.msra.mxu1 %v1839_v35  ;;  %1755 = vmatprep.mubr.msk.bf16.mxu1 %vm1870_vm1, %v1869_v41 }
 0x24e   :  { %1753 = vmatprep.subr.bf16.mxu1 %v1869_v41 }
 0x251   :  { %1754 = vmatpush3.bf16.msra.mxu1 %v1840_v40 }
 0x252   :  { %1767 = vmatprep.subr.bf16.mxu1 %v1869_v41 }
 0x254   :  { %1756 = vmatmul.mubr.msk.bf16.vlgmr.msra.gmra.mxu1 %vm293_vm3, %v1167_v44 }
 0x255   :  { %1768 = vmatpush3.bf16.msra.mxu1 %v1841_v43  ;;  %1771 = vmatprep.mubr.msk.bf16.mxu1 %vm1870_vm1, %v1869_v41 }
 0x256   :  { %1769 = vmatprep.subr.bf16.mxu1 %v1869_v41 }
 0x259   :  { %1770 = vmatpush3.bf16.msra.mxu1 %v1842_v45 }
 0x25c   :  { %1772 = vmatmul.mubr.msk.bf16.vlgmr.msra.gmra.mxu1 %vm293_vm3, %v1291_v46 }
 0x2d4   :  { %v481_v47 = vpop.f32.mrf.mxu1  ;;  %v783_v48 = vpop.f32.mrf.mxu0 }
 0x2d6   :  { %v1661_v49 = vpop.f32.mrf.mxu1  ;;  %v1701_v50 = vpop.f32.mrf.mxu0 }
 0x2d8   :  { %v484_v51 = vpop.f32.mrf.mxu1  ;;  %v786_v52 = vpop.f32.mrf.mxu0 }
 0x2da   :  { %v1662_v53 = vpop.f32.mrf.mxu1  ;;  %v1702_v54 = vpop.f32.mrf.mxu0 }
 0x2dc   :  { %v536_v55 = vpop.f32.mrf.mxu1  ;;  %v907_v56 = vpop.f32.mrf.mxu0 }
 0x2dd   :  { %v537_v20 = vadd.f32 %v536_v55, %v481_v47 }
 0x2de   :  { %v1669_v57 = vpop.f32.mrf.mxu1  ;;  %v1717_v58 = vpop.f32.mrf.mxu0 }
 0x2e0   :  { %v539_v59 = vpop.f32.mrf.mxu1  ;;  %v910_v60 = vpop.f32.mrf.mxu0 }
 0x2e2   :  { %v1670_v41 = vpop.f32.mrf.mxu1  ;;  %v1718_v61 = vpop.f32.mrf.mxu0 }
 0x2e4   :  { %v597_v62 = vpop.f32.mrf.mxu1  ;;  %v1031_v63 = vpop.f32.mrf.mxu0 }
 0x2e5   :  { %v603_v23 = vadd.f32 %v597_v62, %v537_v20 }
 0x2e6   :  { %v1677_v0 = vpop.f32.mrf.mxu1  ;;  %v1733_v1 = vpop.f32.mrf.mxu0 }
 0x2e8   :  { %v600_v2 = vpop.f32.mrf.mxu1  ;;  %v1034_v3 = vpop.f32.mrf.mxu0 }
 0x2ea   :  { %v1678_v4 = vpop.f32.mrf.mxu1  ;;  %v1734_v5 = vpop.f32.mrf.mxu0 }
 0x2ec   :  { %v659_v6 = vpop.f32.mrf.mxu1  ;;  %v1155_v7 = vpop.f32.mrf.mxu0 }
 0x2ed   :  { %v665_v26 = vadd.f32 %v659_v6, %v603_v23 }
 0x2ee   :  { %v1685_v8 = vpop.f32.mrf.mxu1  ;;  %v1749_v9 = vpop.f32.mrf.mxu0 }
 0x2f0   :  { %v662_v10 = vpop.f32.mrf.mxu1  ;;  %v1158_v11 = vpop.f32.mrf.mxu0 }
 0x2f2   :  { %v1686_v12 = vpop.f32.mrf.mxu1  ;;  %v1750_v13 = vpop.f32.mrf.mxu0 }
 0x2f4   :  { %v721_v14 = vpop.f32.mrf.mxu1  ;;  %v1279_v15 = vpop.f32.mrf.mxu0 }
 0x2f5   :  { %v727_v29 = vadd.f32 %v721_v14, %v665_v26 }
 0x2f6   :  { %v1693_v16 = vpop.f32.mrf.mxu1  ;;  %v1765_v17 = vpop.f32.mrf.mxu0 }
 0x2f7   :  { %v789_v34 = vadd.f32 %v783_v48, %v727_v29 }
 0x2f8   :  { %v724_v18 = vpop.f32.mrf.mxu1  ;;  %v1282_v19 = vpop.f32.mrf.mxu0 }
 0x2fa   :  { %v1694_v21 = vpop.f32.mrf.mxu1  ;;  %v1766_v22 = vpop.f32.mrf.mxu0 }
 0x2fc   :  { %v845_v24 = vpop.f32.mrf.mxu1  ;;  %v1403_v25 = vpop.f32.mrf.mxu0 }
 0x2fd   :  { %v851_v36 = vadd.f32 %v845_v24, %v789_v34 }
 0x2fe   :  { %v1709_v27 = vpop.f32.mrf.mxu1  ;;  %v1781_v28 = vpop.f32.mrf.mxu0 }
 0x2ff   :  { %v913_v39 = vadd.f32 %v907_v56, %v851_v36  ;;  %v1570_v56 = vld [vmem:[%s2234_s9] ss:$0 sm:$0xff] }
 0x300   :  { %v848_v30 = vpop.f32.mrf.mxu1  ;;  %v1406_v31 = vpop.f32.mrf.mxu0 }
 0x302   :  { %v1710_v32 = vpop.f32.mrf.mxu1  ;;  %v1782_v33 = vpop.f32.mrf.mxu0 }
 0x304   :  { %v968_v35 = vpop.f32.mrf.mxu1 }
 0x305   :  { %v974_v42 = vadd.f32 %v968_v35, %v913_v39 }
 0x306   :  { %v1725_v37 = vpop.f32.mrf.mxu1 }
 0x307   :  { %v1037_v45 = vadd.f32 %v1031_v63, %v974_v42 }
 0x308   :  { %v971_v38 = vpop.f32.mrf.mxu1 }
 0x30a   :  { %v1726_v40 = vpop.f32.mrf.mxu1 }
 0x30c   :  { %v1093_v43 = vpop.f32.mrf.mxu1 }
 0x30d   :  { %v1099_v47 = vadd.f32 %v1093_v43, %v1037_v45 }
 0x30e   :  { %v1741_v44 = vpop.f32.mrf.mxu1 }
 0x30f   :  { %v1161_v51 = vadd.f32 %v1155_v7, %v1099_v47 }
 0x310   :  { %v1096_v46 = vpop.f32.mrf.mxu1 }
 0x312   :  { %v1742_v49 = vpop.f32.mrf.mxu1 }
 0x314   :  { %v1217_v50 = vpop.f32.mrf.mxu1 }
 0x315   :  { %v1223_v53 = vadd.f32 %v1217_v50, %v1161_v51 }
 0x316   :  { %v1757_v52 = vpop.f32.mrf.mxu1 }
 0x317   :  { %v1285_v48 = vadd.f32 %v1279_v15, %v1223_v53 }
 0x318   :  { %v1220_v54 = vpop.f32.mrf.mxu1 }
 0x31a   :  { %v1758_v55 = vpop.f32.mrf.mxu1 }
 0x31c   :  { %v1341_v57 = vpop.f32.mrf.mxu1 }
 0x31d   :  { %v1347_v58 = vadd.f32 %v1341_v57, %v1285_v48 }
 0x31e   :  { %v1773_v59 = vpop.f32.mrf.mxu1 }
 0x31f   :  { %v1409_v60 = vadd.f32 %v1403_v25, %v1347_v58 }
 0x320   :  { %v1344_v41 = vpop.f32.mrf.mxu1 }
 0x321   :  { %v1417_v61 = vadd.f32 %v1570_v56, %v1409_v60 }
 0x322   :  { %v1774_v62 = vpop.f32.mrf.mxu1 }
 0x323   :  { %1419 = vrot.lane.b32.xlu0 %v1417_v61, %s1871_s4 }
 0x395   :  { %v1420_v63 = vpop.permute.xlu0 %1419 }
 0x396   :  { %1423 = vst.msk [vmem:[#allocation2] sm:$0x3] %vm1422_vm5, %v1420_v63 }
 0x397   :  { %1856 = shalt.err (!%p1853_p4)
}
 0x398   :  { %1433 = dma.vmem_to_hbm [thread:$0]  %s1431_s12, 32, %s2235_s10, [#allocation3]  }
 0x399   :  { %1865 = dma.done.wait [#allocation3], 32  }
 0x39a   :  { %1866 = vsyncadd [#allocation3], 4294967264 }
 0x39b   :  { %1437 = vsyncpa [#allocation3], 1 }

</bundles_post_ra>
